<compile_context>
chip_gen: v5e
topology: v5e:2x2
jax: 0.10.0
libtpu: 0.0.40
codegen_flags: <defaults>
</compile_context>

<pallas_src>
import jax
import jax.numpy as jnp
from jax.experimental import pallas as pl
from jax.experimental.pallas import tpu as pltpu


def gru_kernel(x_ref, len_ref, w_ih_ref, b_gi_ref,
               w_hr_ref, w_hz_ref, w_hn_ref, b_hn_ref,
               w_out_ref, b_out_ref, out_ref):
    """Whole GRU forward in one invocation (no grid).

    x_ref    : (S*Bp, D_in) time-major, batch-padded, row t*Bp+b = x[b, t]
    len_ref  : (Bp, 1) int32 valid lengths (0 for padded rows)
    w_ih_ref : (D_in, 3H)   [W_ir | W_iz | W_in]^T
    b_gi_ref : (1, 3H)      b_ih with b_hr / b_hz folded in (b_hn kept apart)
    w_h*_ref : (H, H)       per-gate recurrent weights (transposed)
    b_hn_ref : (1, H)       stays inside r*(.) per PyTorch GRU
    w_out_ref: (1, H), b_out_ref: (1, 1)
    out_ref  : (Bp, 1)
    """
    Bp = len_ref.shape[0]
    H = w_hr_ref.shape[0]
    S = x_ref.shape[0] // Bp

    # ---- Phase 1: hoisted input projection (one big MXU matmul) -------------
    gi_all = jnp.dot(x_ref[...], w_ih_ref[...],
                     preferred_element_type=jnp.float32) + b_gi_ref[...]
    # Split the gate axis once (not per step) so per-step reads are plain
    # sublane-aligned vreg selects with no lane-offset relayouts.
    gi_r = gi_all[:, 0:H]
    gi_z = gi_all[:, H:2 * H]
    gi_n = gi_all[:, 2 * H:3 * H]

    lengths = len_ref[...]                      # (Bp, 1) int32
    w_hr = w_hr_ref[...]
    w_hz = w_hz_ref[...]
    w_hn = w_hn_ref[...]
    b_hn = b_hn_ref[...]

    # ---- Phase 2: sequential recurrence (S is small & static -> unroll) -----
    h = jnp.zeros((Bp, H), jnp.float32)
    for t in range(S):
        row = t * Bp                            # multiple of 8 -> sublane aligned
        r = jax.nn.sigmoid(gi_r[row:row + Bp, :] +
                           jnp.dot(h, w_hr, preferred_element_type=jnp.float32))
        z = jax.nn.sigmoid(gi_z[row:row + Bp, :] +
                           jnp.dot(h, w_hz, preferred_element_type=jnp.float32))
        n = jnp.tanh(gi_n[row:row + Bp, :] +
                     r * (jnp.dot(h, w_hn, preferred_element_type=jnp.float32)
                          + b_hn))
        h_new = (1.0 - z) * n + z * h
        # pack_padded_sequence semantics: only rows with t < length advance.
        h = jnp.where(t < lengths, h_new, h)

    # ---- Final Linear(H, 1): VPU multiply + lane reduce (no N=1 MXU push) ---
    out_ref[...] = (jnp.sum(h * w_out_ref[...], axis=-1, keepdims=True)
                    + b_out_ref[...])


@jax.jit
def gru_rnn_forward(x, lengths, params):
    """x: (B, S, D_in) float32 (batch_first, like PyTorch); lengths: (B,) int."""
    B, S, D_in = x.shape
    H = params["w_hh"].shape[1]
    Bp = max(8, ((B + 7) // 8) * 8)             # pad batch to a sublane multiple

    # Time-major, batch-padded input built in a single scatter into zeros and
    # flattened to (S*Bp, D_in); no separate transpose round-trip of x.
    x_tm = jnp.zeros((S, Bp, D_in), jnp.float32).at[:, :B, :].set(
        jnp.swapaxes(x, 0, 1))
    x2d = x_tm.reshape(S * Bp, D_in)

    len_p = jnp.zeros((Bp, 1), jnp.int32).at[:B, 0].set(lengths.astype(jnp.int32))

    w_ih_t = params["w_ih"].T                                        # (D_in, 3H)
    # Fold b_hr / b_hz into the precomputed input-side bias; b_hn must stay
    # inside r*(.) per PyTorch GRU, so it is passed separately.
    b_gi = (params["b_ih"] +
            jnp.concatenate([params["b_hh"][:2 * H],
                             jnp.zeros((H,), jnp.float32)])).reshape(1, 3 * H)
    w_hr_t = params["w_hh"][0:H, :].T                                # (H, H)
    w_hz_t = params["w_hh"][H:2 * H, :].T                            # (H, H)
    w_hn_t = params["w_hh"][2 * H:3 * H, :].T                        # (H, H)
    b_hn = params["b_hh"][2 * H:3 * H].reshape(1, H)
    w_out = params["w_out"].reshape(1, H)
    b_out = params["b_out"].reshape(1, 1)

    vmem = pl.BlockSpec(memory_space=pltpu.MemorySpace.VMEM)
    out_p = pl.pallas_call(
        gru_kernel,
        out_shape=jax.ShapeDtypeStruct((Bp, 1), jnp.float32),
        in_specs=[vmem] * 10,
        out_specs=vmem,
    )(x2d, len_p, w_ih_t, b_gi, w_hr_t, w_hz_t, w_hn_t, b_hn, w_out, b_out)

    # PyTorch: hidden is (1, B, H) -> Linear -> (1, B, 1)
    return out_p[:B].reshape(1, B, 1)


def gru_rnn_reference(x, lengths, params):
    """Pure-JAX reference matching PyTorch GRU + packed-sequence semantics."""
    B, S, _ = x.shape
    H = params["w_hh"].shape[1]
    w_ih_t, w_hh_t = params["w_ih"].T, params["w_hh"].T
    h = jnp.zeros((B, H), jnp.float32)
    for t in range(S):
        gi = x[:, t, :] @ w_ih_t + params["b_ih"]
        gh = h @ w_hh_t + params["b_hh"]
        i_r, i_z, i_n = jnp.split(gi, 3, axis=1)
        h_r, h_z, h_n = jnp.split(gh, 3, axis=1)
        r = jax.nn.sigmoid(i_r + h_r)
        z = jax.nn.sigmoid(i_z + h_z)
        n = jnp.tanh(i_n + r * h_n)
        h_new = (1.0 - z) * n + z * h
        mask = (t < lengths).astype(jnp.float32)[:, None]
        h = mask * h_new + (1.0 - mask) * h
    out = h @ params["w_out"].T + params["b_out"]
    return out.reshape(1, B, 1)


if __name__ == "__main__":
    B, S, D_in, H = 2, 8, 16, 32

    key = jax.random.PRNGKey(0)
    keys = jax.random.split(key, 7)
    k_w = 1.0 / (H ** 0.5)
    params = {
        # PyTorch GRU param shapes: weight_ih_l0 (3H, D_in), weight_hh_l0 (3H, H)
        "w_ih": jax.random.uniform(keys[0], (3 * H, D_in), jnp.float32, -k_w, k_w),
        "w_hh": jax.random.uniform(keys[1], (3 * H, H), jnp.float32, -k_w, k_w),
        "b_ih": jax.random.uniform(keys[2], (3 * H,), jnp.float32, -k_w, k_w),
        "b_hh": jax.random.uniform(keys[3], (3 * H,), jnp.float32, -k_w, k_w),
        # Linear(H, 1): weight (1, H), bias (1,)
        "w_out": jax.random.uniform(keys[4], (1, H), jnp.float32, -k_w, k_w),
        "b_out": jax.random.uniform(keys[5], (1,), jnp.float32, -k_w, k_w),
    }

    x = jax.random.normal(keys[6], (B, S, D_in), jnp.float32)
    # pack_padded_sequence(enforce_sorted=True) => lengths sorted descending
    lengths = jnp.array([8, 5], jnp.int32)

    out = gru_rnn_forward(x, lengths, params)
    out = jax.block_until_ready(out)

    ref = gru_rnn_reference(x, lengths, params)
    assert out.shape == (1, B, 1), out.shape
    assert jnp.allclose(out, ref, rtol=1e-5, atol=1e-5), (out, ref)
    print("KERNEL_OK")
</pallas_src>

<mosaic_0001>
module attributes {stable_mosaic.version = 11 : i64} {
  func.func @gru_kernel(%arg0: memref<64x16xf32, #tpu.memory_space<vmem>>, %arg1: memref<8x1xi32, #tpu.memory_space<vmem>>, %arg2: memref<16x96xf32, #tpu.memory_space<vmem>>, %arg3: memref<1x96xf32, #tpu.memory_space<vmem>>, %arg4: memref<32x32xf32, #tpu.memory_space<vmem>>, %arg5: memref<32x32xf32, #tpu.memory_space<vmem>>, %arg6: memref<32x32xf32, #tpu.memory_space<vmem>>, %arg7: memref<1x32xf32, #tpu.memory_space<vmem>>, %arg8: memref<1x32xf32, #tpu.memory_space<vmem>>, %arg9: memref<1x1xf32, #tpu.memory_space<vmem>>, %arg10: memref<8x1xf32, #tpu.memory_space<vmem>>) attributes {dimension_semantics = [], scalar_prefetch = 0 : i64, scratch_operands = 0 : i64, tpu.core_type = #tpu.core_type<tc>} {
    %c0 = arith.constant 0 : index
    %c0_0 = arith.constant 0 : index
    %0 = vector.load %arg0[%c0, %c0_0] : memref<64x16xf32, #tpu.memory_space<vmem>>, vector<64x16xf32>
    %c0_1 = arith.constant 0 : index
    %c0_2 = arith.constant 0 : index
    %1 = vector.load %arg2[%c0_1, %c0_2] : memref<16x96xf32, #tpu.memory_space<vmem>>, vector<16x96xf32>
    %cst = arith.constant dense<0.000000e+00> : vector<64x96xf32>
    %2 = tpu.matmul %0, %1, %cst {dimension_numbers = #tpu.dot_dimension_numbers<[1], [0], [0], [1], [0, 0, 1, 1], [], []>} : vector<64x16xf32>, vector<16x96xf32>, vector<64x96xf32> -> vector<64x96xf32>
    %c0_3 = arith.constant 0 : index
    %c0_4 = arith.constant 0 : index
    %3 = vector.load %arg3[%c0_3, %c0_4] : memref<1x96xf32, #tpu.memory_space<vmem>>, vector<1x96xf32>
    %4 = vector.broadcast %3 : vector<1x96xf32> to vector<64x96xf32>
    %5 = arith.addf %2, %4 : vector<64x96xf32>
    %6 = vector.extract_strided_slice %5 {offsets = [0, 0], sizes = [64, 32], strides = [1, 1]} : vector<64x96xf32> to vector<64x32xf32>
    %7 = vector.extract_strided_slice %5 {offsets = [0, 32], sizes = [64, 32], strides = [1, 1]} : vector<64x96xf32> to vector<64x32xf32>
    %8 = vector.extract_strided_slice %5 {offsets = [0, 64], sizes = [64, 32], strides = [1, 1]} : vector<64x96xf32> to vector<64x32xf32>
    %c0_5 = arith.constant 0 : index
    %c0_6 = arith.constant 0 : index
    %9 = vector.load %arg1[%c0_5, %c0_6] : memref<8x1xi32, #tpu.memory_space<vmem>>, vector<8x1xi32>
    %c0_7 = arith.constant 0 : index
    %c0_8 = arith.constant 0 : index
    %10 = vector.load %arg4[%c0_7, %c0_8] : memref<32x32xf32, #tpu.memory_space<vmem>>, vector<32x32xf32>
    %c0_9 = arith.constant 0 : index
    %c0_10 = arith.constant 0 : index
    %11 = vector.load %arg5[%c0_9, %c0_10] : memref<32x32xf32, #tpu.memory_space<vmem>>, vector<32x32xf32>
    %c0_11 = arith.constant 0 : index
    %c0_12 = arith.constant 0 : index
    %12 = vector.load %arg6[%c0_11, %c0_12] : memref<32x32xf32, #tpu.memory_space<vmem>>, vector<32x32xf32>
    %c0_13 = arith.constant 0 : index
    %c0_14 = arith.constant 0 : index
    %13 = vector.load %arg7[%c0_13, %c0_14] : memref<1x32xf32, #tpu.memory_space<vmem>>, vector<1x32xf32>
    %cst_15 = arith.constant 0.000000e+00 : f32
    %14 = vector.broadcast %cst_15 : f32 to vector<8x32xf32>
    %15 = vector.extract_strided_slice %6 {offsets = [0, 0], sizes = [8, 32], strides = [1, 1]} : vector<64x32xf32> to vector<8x32xf32>
    %cst_16 = arith.constant dense<0.000000e+00> : vector<8x32xf32>
    %16 = tpu.matmul %14, %10, %cst_16 {dimension_numbers = #tpu.dot_dimension_numbers<[1], [0], [0], [1], [0, 0, 1, 1], [], []>} : vector<8x32xf32>, vector<32x32xf32>, vector<8x32xf32> -> vector<8x32xf32>
    %17 = arith.addf %15, %16 : vector<8x32xf32>
    %18 = arith.negf %17 : vector<8x32xf32>
    %19 = math.exp %18 : vector<8x32xf32>
    %cst_17 = arith.constant 1.000000e+00 : f32
    %20 = vector.broadcast %cst_17 : f32 to vector<8x32xf32>
    %21 = arith.addf %20, %19 : vector<8x32xf32>
    %22 = arith.divf %20, %21 : vector<8x32xf32>
    %23 = vector.extract_strided_slice %7 {offsets = [0, 0], sizes = [8, 32], strides = [1, 1]} : vector<64x32xf32> to vector<8x32xf32>
    %cst_18 = arith.constant dense<0.000000e+00> : vector<8x32xf32>
    %24 = tpu.matmul %14, %11, %cst_18 {dimension_numbers = #tpu.dot_dimension_numbers<[1], [0], [0], [1], [0, 0, 1, 1], [], []>} : vector<8x32xf32>, vector<32x32xf32>, vector<8x32xf32> -> vector<8x32xf32>
    %25 = arith.addf %23, %24 : vector<8x32xf32>
    %26 = arith.negf %25 : vector<8x32xf32>
    %27 = math.exp %26 : vector<8x32xf32>
    %cst_19 = arith.constant 1.000000e+00 : f32
    %28 = vector.broadcast %cst_19 : f32 to vector<8x32xf32>
    %29 = arith.addf %28, %27 : vector<8x32xf32>
    %30 = arith.divf %28, %29 : vector<8x32xf32>
    %31 = vector.extract_strided_slice %8 {offsets = [0, 0], sizes = [8, 32], strides = [1, 1]} : vector<64x32xf32> to vector<8x32xf32>
    %cst_20 = arith.constant dense<0.000000e+00> : vector<8x32xf32>
    %32 = tpu.matmul %14, %12, %cst_20 {dimension_numbers = #tpu.dot_dimension_numbers<[1], [0], [0], [1], [0, 0, 1, 1], [], []>} : vector<8x32xf32>, vector<32x32xf32>, vector<8x32xf32> -> vector<8x32xf32>
    %33 = vector.broadcast %13 : vector<1x32xf32> to vector<8x32xf32>
    %34 = arith.addf %32, %33 : vector<8x32xf32>
    %35 = arith.mulf %22, %34 : vector<8x32xf32>
    %36 = arith.addf %31, %35 : vector<8x32xf32>
    %37 = math.tanh %36 : vector<8x32xf32>
    %cst_21 = arith.constant 1.000000e+00 : f32
    %38 = vector.broadcast %cst_21 : f32 to vector<8x32xf32>
    %39 = arith.subf %38, %30 : vector<8x32xf32>
    %40 = arith.mulf %39, %37 : vector<8x32xf32>
    %41 = arith.mulf %30, %14 : vector<8x32xf32>
    %42 = arith.addf %40, %41 : vector<8x32xf32>
    %c0_i32 = arith.constant 0 : i32
    %43 = vector.broadcast %c0_i32 : i32 to vector<8x1xi32>
    %44 = arith.cmpi sgt, %9, %43 : vector<8x1xi32>
    %45 = vector.shape_cast %44 : vector<8x1xi1> to vector<8x1xi1>
    %46 = vector.broadcast %45 : vector<8x1xi1> to vector<8x32xi1>
    %47 = arith.select %46, %42, %14 : vector<8x32xi1>, vector<8x32xf32>
    %48 = vector.extract_strided_slice %6 {offsets = [8, 0], sizes = [8, 32], strides = [1, 1]} : vector<64x32xf32> to vector<8x32xf32>
    %cst_22 = arith.constant dense<0.000000e+00> : vector<8x32xf32>
    %49 = tpu.matmul %47, %10, %cst_22 {dimension_numbers = #tpu.dot_dimension_numbers<[1], [0], [0], [1], [0, 0, 1, 1], [], []>} : vector<8x32xf32>, vector<32x32xf32>, vector<8x32xf32> -> vector<8x32xf32>
    %50 = arith.addf %48, %49 : vector<8x32xf32>
    %51 = arith.negf %50 : vector<8x32xf32>
    %52 = math.exp %51 : vector<8x32xf32>
    %cst_23 = arith.constant 1.000000e+00 : f32
    %53 = vector.broadcast %cst_23 : f32 to vector<8x32xf32>
    %54 = arith.addf %53, %52 : vector<8x32xf32>
    %55 = arith.divf %53, %54 : vector<8x32xf32>
    %56 = vector.extract_strided_slice %7 {offsets = [8, 0], sizes = [8, 32], strides = [1, 1]} : vector<64x32xf32> to vector<8x32xf32>
    %cst_24 = arith.constant dense<0.000000e+00> : vector<8x32xf32>
    %57 = tpu.matmul %47, %11, %cst_24 {dimension_numbers = #tpu.dot_dimension_numbers<[1], [0], [0], [1], [0, 0, 1, 1], [], []>} : vector<8x32xf32>, vector<32x32xf32>, vector<8x32xf32> -> vector<8x32xf32>
    %58 = arith.addf %56, %57 : vector<8x32xf32>
    %59 = arith.negf %58 : vector<8x32xf32>
    %60 = math.exp %59 : vector<8x32xf32>
    %cst_25 = arith.constant 1.000000e+00 : f32
    %61 = vector.broadcast %cst_25 : f32 to vector<8x32xf32>
    %62 = arith.addf %61, %60 : vector<8x32xf32>
    %63 = arith.divf %61, %62 : vector<8x32xf32>
    %64 = vector.extract_strided_slice %8 {offsets = [8, 0], sizes = [8, 32], strides = [1, 1]} : vector<64x32xf32> to vector<8x32xf32>
    %cst_26 = arith.constant dense<0.000000e+00> : vector<8x32xf32>
    %65 = tpu.matmul %47, %12, %cst_26 {dimension_numbers = #tpu.dot_dimension_numbers<[1], [0], [0], [1], [0, 0, 1, 1], [], []>} : vector<8x32xf32>, vector<32x32xf32>, vector<8x32xf32> -> vector<8x32xf32>
    %66 = vector.broadcast %13 : vector<1x32xf32> to vector<8x32xf32>
    %67 = arith.addf %65, %66 : vector<8x32xf32>
    %68 = arith.mulf %55, %67 : vector<8x32xf32>
    %69 = arith.addf %64, %68 : vector<8x32xf32>
    %70 = math.tanh %69 : vector<8x32xf32>
    %cst_27 = arith.constant 1.000000e+00 : f32
    %71 = vector.broadcast %cst_27 : f32 to vector<8x32xf32>
    %72 = arith.subf %71, %63 : vector<8x32xf32>
    %73 = arith.mulf %72, %70 : vector<8x32xf32>
    %74 = arith.mulf %63, %47 : vector<8x32xf32>
    %75 = arith.addf %73, %74 : vector<8x32xf32>
    %c1_i32 = arith.constant 1 : i32
    %76 = vector.broadcast %c1_i32 : i32 to vector<8x1xi32>
    %77 = arith.cmpi sgt, %9, %76 : vector<8x1xi32>
    %78 = vector.shape_cast %77 : vector<8x1xi1> to vector<8x1xi1>
    %79 = vector.broadcast %78 : vector<8x1xi1> to vector<8x32xi1>
    %80 = arith.select %79, %75, %47 : vector<8x32xi1>, vector<8x32xf32>
    %81 = vector.extract_strided_slice %6 {offsets = [16, 0], sizes = [8, 32], strides = [1, 1]} : vector<64x32xf32> to vector<8x32xf32>
    %cst_28 = arith.constant dense<0.000000e+00> : vector<8x32xf32>
    %82 = tpu.matmul %80, %10, %cst_28 {dimension_numbers = #tpu.dot_dimension_numbers<[1], [0], [0], [1], [0, 0, 1, 1], [], []>} : vector<8x32xf32>, vector<32x32xf32>, vector<8x32xf32> -> vector<8x32xf32>
    %83 = arith.addf %81, %82 : vector<8x32xf32>
    %84 = arith.negf %83 : vector<8x32xf32>
    %85 = math.exp %84 : vector<8x32xf32>
    %cst_29 = arith.constant 1.000000e+00 : f32
    %86 = vector.broadcast %cst_29 : f32 to vector<8x32xf32>
    %87 = arith.addf %86, %85 : vector<8x32xf32>
    %88 = arith.divf %86, %87 : vector<8x32xf32>
    %89 = vector.extract_strided_slice %7 {offsets = [16, 0], sizes = [8, 32], strides = [1, 1]} : vector<64x32xf32> to vector<8x32xf32>
    %cst_30 = arith.constant dense<0.000000e+00> : vector<8x32xf32>
    %90 = tpu.matmul %80, %11, %cst_30 {dimension_numbers = #tpu.dot_dimension_numbers<[1], [0], [0], [1], [0, 0, 1, 1], [], []>} : vector<8x32xf32>, vector<32x32xf32>, vector<8x32xf32> -> vector<8x32xf32>
    %91 = arith.addf %89, %90 : vector<8x32xf32>
    %92 = arith.negf %91 : vector<8x32xf32>
    %93 = math.exp %92 : vector<8x32xf32>
    %cst_31 = arith.constant 1.000000e+00 : f32
    %94 = vector.broadcast %cst_31 : f32 to vector<8x32xf32>
    %95 = arith.addf %94, %93 : vector<8x32xf32>
    %96 = arith.divf %94, %95 : vector<8x32xf32>
    %97 = vector.extract_strided_slice %8 {offsets = [16, 0], sizes = [8, 32], strides = [1, 1]} : vector<64x32xf32> to vector<8x32xf32>
    %cst_32 = arith.constant dense<0.000000e+00> : vector<8x32xf32>
    %98 = tpu.matmul %80, %12, %cst_32 {dimension_numbers = #tpu.dot_dimension_numbers<[1], [0], [0], [1], [0, 0, 1, 1], [], []>} : vector<8x32xf32>, vector<32x32xf32>, vector<8x32xf32> -> vector<8x32xf32>
    %99 = vector.broadcast %13 : vector<1x32xf32> to vector<8x32xf32>
    %100 = arith.addf %98, %99 : vector<8x32xf32>
    %101 = arith.mulf %88, %100 : vector<8x32xf32>
    %102 = arith.addf %97, %101 : vector<8x32xf32>
    %103 = math.tanh %102 : vector<8x32xf32>
    %cst_33 = arith.constant 1.000000e+00 : f32
    %104 = vector.broadcast %cst_33 : f32 to vector<8x32xf32>
    %105 = arith.subf %104, %96 : vector<8x32xf32>
    %106 = arith.mulf %105, %103 : vector<8x32xf32>
    %107 = arith.mulf %96, %80 : vector<8x32xf32>
    %108 = arith.addf %106, %107 : vector<8x32xf32>
    %c2_i32 = arith.constant 2 : i32
    %109 = vector.broadcast %c2_i32 : i32 to vector<8x1xi32>
    %110 = arith.cmpi sgt, %9, %109 : vector<8x1xi32>
    %111 = vector.shape_cast %110 : vector<8x1xi1> to vector<8x1xi1>
    %112 = vector.broadcast %111 : vector<8x1xi1> to vector<8x32xi1>
    %113 = arith.select %112, %108, %80 : vector<8x32xi1>, vector<8x32xf32>
    %114 = vector.extract_strided_slice %6 {offsets = [24, 0], sizes = [8, 32], strides = [1, 1]} : vector<64x32xf32> to vector<8x32xf32>
    %cst_34 = arith.constant dense<0.000000e+00> : vector<8x32xf32>
    %115 = tpu.matmul %113, %10, %cst_34 {dimension_numbers = #tpu.dot_dimension_numbers<[1], [0], [0], [1], [0, 0, 1, 1], [], []>} : vector<8x32xf32>, vector<32x32xf32>, vector<8x32xf32> -> vector<8x32xf32>
    %116 = arith.addf %114, %115 : vector<8x32xf32>
    %117 = arith.negf %116 : vector<8x32xf32>
    %118 = math.exp %117 : vector<8x32xf32>
    %cst_35 = arith.constant 1.000000e+00 : f32
    %119 = vector.broadcast %cst_35 : f32 to vector<8x32xf32>
    %120 = arith.addf %119, %118 : vector<8x32xf32>
    %121 = arith.divf %119, %120 : vector<8x32xf32>
    %122 = vector.extract_strided_slice %7 {offsets = [24, 0], sizes = [8, 32], strides = [1, 1]} : vector<64x32xf32> to vector<8x32xf32>
    %cst_36 = arith.constant dense<0.000000e+00> : vector<8x32xf32>
    %123 = tpu.matmul %113, %11, %cst_36 {dimension_numbers = #tpu.dot_dimension_numbers<[1], [0], [0], [1], [0, 0, 1, 1], [], []>} : vector<8x32xf32>, vector<32x32xf32>, vector<8x32xf32> -> vector<8x32xf32>
    %124 = arith.addf %122, %123 : vector<8x32xf32>
    %125 = arith.negf %124 : vector<8x32xf32>
    %126 = math.exp %125 : vector<8x32xf32>
    %cst_37 = arith.constant 1.000000e+00 : f32
    %127 = vector.broadcast %cst_37 : f32 to vector<8x32xf32>
    %128 = arith.addf %127, %126 : vector<8x32xf32>
    %129 = arith.divf %127, %128 : vector<8x32xf32>
    %130 = vector.extract_strided_slice %8 {offsets = [24, 0], sizes = [8, 32], strides = [1, 1]} : vector<64x32xf32> to vector<8x32xf32>
    %cst_38 = arith.constant dense<0.000000e+00> : vector<8x32xf32>
    %131 = tpu.matmul %113, %12, %cst_38 {dimension_numbers = #tpu.dot_dimension_numbers<[1], [0], [0], [1], [0, 0, 1, 1], [], []>} : vector<8x32xf32>, vector<32x32xf32>, vector<8x32xf32> -> vector<8x32xf32>
    %132 = vector.broadcast %13 : vector<1x32xf32> to vector<8x32xf32>
    %133 = arith.addf %131, %132 : vector<8x32xf32>
    %134 = arith.mulf %121, %133 : vector<8x32xf32>
    %135 = arith.addf %130, %134 : vector<8x32xf32>
    %136 = math.tanh %135 : vector<8x32xf32>
    %cst_39 = arith.constant 1.000000e+00 : f32
    %137 = vector.broadcast %cst_39 : f32 to vector<8x32xf32>
    %138 = arith.subf %137, %129 : vector<8x32xf32>
    %139 = arith.mulf %138, %136 : vector<8x32xf32>
    %140 = arith.mulf %129, %113 : vector<8x32xf32>
    %141 = arith.addf %139, %140 : vector<8x32xf32>
    %c3_i32 = arith.constant 3 : i32
    %142 = vector.broadcast %c3_i32 : i32 to vector<8x1xi32>
    %143 = arith.cmpi sgt, %9, %142 : vector<8x1xi32>
    %144 = vector.shape_cast %143 : vector<8x1xi1> to vector<8x1xi1>
    %145 = vector.broadcast %144 : vector<8x1xi1> to vector<8x32xi1>
    %146 = arith.select %145, %141, %113 : vector<8x32xi1>, vector<8x32xf32>
    %147 = vector.extract_strided_slice %6 {offsets = [32, 0], sizes = [8, 32], strides = [1, 1]} : vector<64x32xf32> to vector<8x32xf32>
    %cst_40 = arith.constant dense<0.000000e+00> : vector<8x32xf32>
    %148 = tpu.matmul %146, %10, %cst_40 {dimension_numbers = #tpu.dot_dimension_numbers<[1], [0], [0], [1], [0, 0, 1, 1], [], []>} : vector<8x32xf32>, vector<32x32xf32>, vector<8x32xf32> -> vector<8x32xf32>
    %149 = arith.addf %147, %148 : vector<8x32xf32>
    %150 = arith.negf %149 : vector<8x32xf32>
    %151 = math.exp %150 : vector<8x32xf32>
    %cst_41 = arith.constant 1.000000e+00 : f32
    %152 = vector.broadcast %cst_41 : f32 to vector<8x32xf32>
    %153 = arith.addf %152, %151 : vector<8x32xf32>
    %154 = arith.divf %152, %153 : vector<8x32xf32>
    %155 = vector.extract_strided_slice %7 {offsets = [32, 0], sizes = [8, 32], strides = [1, 1]} : vector<64x32xf32> to vector<8x32xf32>
    %cst_42 = arith.constant dense<0.000000e+00> : vector<8x32xf32>
    %156 = tpu.matmul %146, %11, %cst_42 {dimension_numbers = #tpu.dot_dimension_numbers<[1], [0], [0], [1], [0, 0, 1, 1], [], []>} : vector<8x32xf32>, vector<32x32xf32>, vector<8x32xf32> -> vector<8x32xf32>
    %157 = arith.addf %155, %156 : vector<8x32xf32>
    %158 = arith.negf %157 : vector<8x32xf32>
    %159 = math.exp %158 : vector<8x32xf32>
    %cst_43 = arith.constant 1.000000e+00 : f32
    %160 = vector.broadcast %cst_43 : f32 to vector<8x32xf32>
    %161 = arith.addf %160, %159 : vector<8x32xf32>
    %162 = arith.divf %160, %161 : vector<8x32xf32>
    %163 = vector.extract_strided_slice %8 {offsets = [32, 0], sizes = [8, 32], strides = [1, 1]} : vector<64x32xf32> to vector<8x32xf32>
    %cst_44 = arith.constant dense<0.000000e+00> : vector<8x32xf32>
    %164 = tpu.matmul %146, %12, %cst_44 {dimension_numbers = #tpu.dot_dimension_numbers<[1], [0], [0], [1], [0, 0, 1, 1], [], []>} : vector<8x32xf32>, vector<32x32xf32>, vector<8x32xf32> -> vector<8x32xf32>
    %165 = vector.broadcast %13 : vector<1x32xf32> to vector<8x32xf32>
    %166 = arith.addf %164, %165 : vector<8x32xf32>
    %167 = arith.mulf %154, %166 : vector<8x32xf32>
    %168 = arith.addf %163, %167 : vector<8x32xf32>
    %169 = math.tanh %168 : vector<8x32xf32>
    %cst_45 = arith.constant 1.000000e+00 : f32
    %170 = vector.broadcast %cst_45 : f32 to vector<8x32xf32>
    %171 = arith.subf %170, %162 : vector<8x32xf32>
    %172 = arith.mulf %171, %169 : vector<8x32xf32>
    %173 = arith.mulf %162, %146 : vector<8x32xf32>
    %174 = arith.addf %172, %173 : vector<8x32xf32>
    %c4_i32 = arith.constant 4 : i32
    %175 = vector.broadcast %c4_i32 : i32 to vector<8x1xi32>
    %176 = arith.cmpi sgt, %9, %175 : vector<8x1xi32>
    %177 = vector.shape_cast %176 : vector<8x1xi1> to vector<8x1xi1>
    %178 = vector.broadcast %177 : vector<8x1xi1> to vector<8x32xi1>
    %179 = arith.select %178, %174, %146 : vector<8x32xi1>, vector<8x32xf32>
    %180 = vector.extract_strided_slice %6 {offsets = [40, 0], sizes = [8, 32], strides = [1, 1]} : vector<64x32xf32> to vector<8x32xf32>
    %cst_46 = arith.constant dense<0.000000e+00> : vector<8x32xf32>
    %181 = tpu.matmul %179, %10, %cst_46 {dimension_numbers = #tpu.dot_dimension_numbers<[1], [0], [0], [1], [0, 0, 1, 1], [], []>} : vector<8x32xf32>, vector<32x32xf32>, vector<8x32xf32> -> vector<8x32xf32>
    %182 = arith.addf %180, %181 : vector<8x32xf32>
    %183 = arith.negf %182 : vector<8x32xf32>
    %184 = math.exp %183 : vector<8x32xf32>
    %cst_47 = arith.constant 1.000000e+00 : f32
    %185 = vector.broadcast %cst_47 : f32 to vector<8x32xf32>
    %186 = arith.addf %185, %184 : vector<8x32xf32>
    %187 = arith.divf %185, %186 : vector<8x32xf32>
    %188 = vector.extract_strided_slice %7 {offsets = [40, 0], sizes = [8, 32], strides = [1, 1]} : vector<64x32xf32> to vector<8x32xf32>
    %cst_48 = arith.constant dense<0.000000e+00> : vector<8x32xf32>
    %189 = tpu.matmul %179, %11, %cst_48 {dimension_numbers = #tpu.dot_dimension_numbers<[1], [0], [0], [1], [0, 0, 1, 1], [], []>} : vector<8x32xf32>, vector<32x32xf32>, vector<8x32xf32> -> vector<8x32xf32>
    %190 = arith.addf %188, %189 : vector<8x32xf32>
    %191 = arith.negf %190 : vector<8x32xf32>
    %192 = math.exp %191 : vector<8x32xf32>
    %cst_49 = arith.constant 1.000000e+00 : f32
    %193 = vector.broadcast %cst_49 : f32 to vector<8x32xf32>
    %194 = arith.addf %193, %192 : vector<8x32xf32>
    %195 = arith.divf %193, %194 : vector<8x32xf32>
    %196 = vector.extract_strided_slice %8 {offsets = [40, 0], sizes = [8, 32], strides = [1, 1]} : vector<64x32xf32> to vector<8x32xf32>
    %cst_50 = arith.constant dense<0.000000e+00> : vector<8x32xf32>
    %197 = tpu.matmul %179, %12, %cst_50 {dimension_numbers = #tpu.dot_dimension_numbers<[1], [0], [0], [1], [0, 0, 1, 1], [], []>} : vector<8x32xf32>, vector<32x32xf32>, vector<8x32xf32> -> vector<8x32xf32>
    %198 = vector.broadcast %13 : vector<1x32xf32> to vector<8x32xf32>
    %199 = arith.addf %197, %198 : vector<8x32xf32>
    %200 = arith.mulf %187, %199 : vector<8x32xf32>
    %201 = arith.addf %196, %200 : vector<8x32xf32>
    %202 = math.tanh %201 : vector<8x32xf32>
    %cst_51 = arith.constant 1.000000e+00 : f32
    %203 = vector.broadcast %cst_51 : f32 to vector<8x32xf32>
    %204 = arith.subf %203, %195 : vector<8x32xf32>
    %205 = arith.mulf %204, %202 : vector<8x32xf32>
    %206 = arith.mulf %195, %179 : vector<8x32xf32>
    %207 = arith.addf %205, %206 : vector<8x32xf32>
    %c5_i32 = arith.constant 5 : i32
    %208 = vector.broadcast %c5_i32 : i32 to vector<8x1xi32>
    %209 = arith.cmpi sgt, %9, %208 : vector<8x1xi32>
    %210 = vector.shape_cast %209 : vector<8x1xi1> to vector<8x1xi1>
    %211 = vector.broadcast %210 : vector<8x1xi1> to vector<8x32xi1>
    %212 = arith.select %211, %207, %179 : vector<8x32xi1>, vector<8x32xf32>
    %213 = vector.extract_strided_slice %6 {offsets = [48, 0], sizes = [8, 32], strides = [1, 1]} : vector<64x32xf32> to vector<8x32xf32>
    %cst_52 = arith.constant dense<0.000000e+00> : vector<8x32xf32>
    %214 = tpu.matmul %212, %10, %cst_52 {dimension_numbers = #tpu.dot_dimension_numbers<[1], [0], [0], [1], [0, 0, 1, 1], [], []>} : vector<8x32xf32>, vector<32x32xf32>, vector<8x32xf32> -> vector<8x32xf32>
    %215 = arith.addf %213, %214 : vector<8x32xf32>
    %216 = arith.negf %215 : vector<8x32xf32>
    %217 = math.exp %216 : vector<8x32xf32>
    %cst_53 = arith.constant 1.000000e+00 : f32
    %218 = vector.broadcast %cst_53 : f32 to vector<8x32xf32>
    %219 = arith.addf %218, %217 : vector<8x32xf32>
    %220 = arith.divf %218, %219 : vector<8x32xf32>
    %221 = vector.extract_strided_slice %7 {offsets = [48, 0], sizes = [8, 32], strides = [1, 1]} : vector<64x32xf32> to vector<8x32xf32>
    %cst_54 = arith.constant dense<0.000000e+00> : vector<8x32xf32>
    %222 = tpu.matmul %212, %11, %cst_54 {dimension_numbers = #tpu.dot_dimension_numbers<[1], [0], [0], [1], [0, 0, 1, 1], [], []>} : vector<8x32xf32>, vector<32x32xf32>, vector<8x32xf32> -> vector<8x32xf32>
    %223 = arith.addf %221, %222 : vector<8x32xf32>
    %224 = arith.negf %223 : vector<8x32xf32>
    %225 = math.exp %224 : vector<8x32xf32>
    %cst_55 = arith.constant 1.000000e+00 : f32
    %226 = vector.broadcast %cst_55 : f32 to vector<8x32xf32>
    %227 = arith.addf %226, %225 : vector<8x32xf32>
    %228 = arith.divf %226, %227 : vector<8x32xf32>
    %229 = vector.extract_strided_slice %8 {offsets = [48, 0], sizes = [8, 32], strides = [1, 1]} : vector<64x32xf32> to vector<8x32xf32>
    %cst_56 = arith.constant dense<0.000000e+00> : vector<8x32xf32>
    %230 = tpu.matmul %212, %12, %cst_56 {dimension_numbers = #tpu.dot_dimension_numbers<[1], [0], [0], [1], [0, 0, 1, 1], [], []>} : vector<8x32xf32>, vector<32x32xf32>, vector<8x32xf32> -> vector<8x32xf32>
    %231 = vector.broadcast %13 : vector<1x32xf32> to vector<8x32xf32>
    %232 = arith.addf %230, %231 : vector<8x32xf32>
    %233 = arith.mulf %220, %232 : vector<8x32xf32>
    %234 = arith.addf %229, %233 : vector<8x32xf32>
    %235 = math.tanh %234 : vector<8x32xf32>
    %cst_57 = arith.constant 1.000000e+00 : f32
    %236 = vector.broadcast %cst_57 : f32 to vector<8x32xf32>
    %237 = arith.subf %236, %228 : vector<8x32xf32>
    %238 = arith.mulf %237, %235 : vector<8x32xf32>
    %239 = arith.mulf %228, %212 : vector<8x32xf32>
    %240 = arith.addf %238, %239 : vector<8x32xf32>
    %c6_i32 = arith.constant 6 : i32
    %241 = vector.broadcast %c6_i32 : i32 to vector<8x1xi32>
    %242 = arith.cmpi sgt, %9, %241 : vector<8x1xi32>
    %243 = vector.shape_cast %242 : vector<8x1xi1> to vector<8x1xi1>
    %244 = vector.broadcast %243 : vector<8x1xi1> to vector<8x32xi1>
    %245 = arith.select %244, %240, %212 : vector<8x32xi1>, vector<8x32xf32>
    %246 = vector.extract_strided_slice %6 {offsets = [56, 0], sizes = [8, 32], strides = [1, 1]} : vector<64x32xf32> to vector<8x32xf32>
    %cst_58 = arith.constant dense<0.000000e+00> : vector<8x32xf32>
    %247 = tpu.matmul %245, %10, %cst_58 {dimension_numbers = #tpu.dot_dimension_numbers<[1], [0], [0], [1], [0, 0, 1, 1], [], []>} : vector<8x32xf32>, vector<32x32xf32>, vector<8x32xf32> -> vector<8x32xf32>
    %248 = arith.addf %246, %247 : vector<8x32xf32>
    %249 = arith.negf %248 : vector<8x32xf32>
    %250 = math.exp %249 : vector<8x32xf32>
    %cst_59 = arith.constant 1.000000e+00 : f32
    %251 = vector.broadcast %cst_59 : f32 to vector<8x32xf32>
    %252 = arith.addf %251, %250 : vector<8x32xf32>
    %253 = arith.divf %251, %252 : vector<8x32xf32>
    %254 = vector.extract_strided_slice %7 {offsets = [56, 0], sizes = [8, 32], strides = [1, 1]} : vector<64x32xf32> to vector<8x32xf32>
    %cst_60 = arith.constant dense<0.000000e+00> : vector<8x32xf32>
    %255 = tpu.matmul %245, %11, %cst_60 {dimension_numbers = #tpu.dot_dimension_numbers<[1], [0], [0], [1], [0, 0, 1, 1], [], []>} : vector<8x32xf32>, vector<32x32xf32>, vector<8x32xf32> -> vector<8x32xf32>
    %256 = arith.addf %254, %255 : vector<8x32xf32>
    %257 = arith.negf %256 : vector<8x32xf32>
    %258 = math.exp %257 : vector<8x32xf32>
    %cst_61 = arith.constant 1.000000e+00 : f32
    %259 = vector.broadcast %cst_61 : f32 to vector<8x32xf32>
    %260 = arith.addf %259, %258 : vector<8x32xf32>
    %261 = arith.divf %259, %260 : vector<8x32xf32>
    %262 = vector.extract_strided_slice %8 {offsets = [56, 0], sizes = [8, 32], strides = [1, 1]} : vector<64x32xf32> to vector<8x32xf32>
    %cst_62 = arith.constant dense<0.000000e+00> : vector<8x32xf32>
    %263 = tpu.matmul %245, %12, %cst_62 {dimension_numbers = #tpu.dot_dimension_numbers<[1], [0], [0], [1], [0, 0, 1, 1], [], []>} : vector<8x32xf32>, vector<32x32xf32>, vector<8x32xf32> -> vector<8x32xf32>
    %264 = vector.broadcast %13 : vector<1x32xf32> to vector<8x32xf32>
    %265 = arith.addf %263, %264 : vector<8x32xf32>
    %266 = arith.mulf %253, %265 : vector<8x32xf32>
    %267 = arith.addf %262, %266 : vector<8x32xf32>
    %268 = math.tanh %267 : vector<8x32xf32>
    %cst_63 = arith.constant 1.000000e+00 : f32
    %269 = vector.broadcast %cst_63 : f32 to vector<8x32xf32>
    %270 = arith.subf %269, %261 : vector<8x32xf32>
    %271 = arith.mulf %270, %268 : vector<8x32xf32>
    %272 = arith.mulf %261, %245 : vector<8x32xf32>
    %273 = arith.addf %271, %272 : vector<8x32xf32>
    %c7_i32 = arith.constant 7 : i32
    %274 = vector.broadcast %c7_i32 : i32 to vector<8x1xi32>
    %275 = arith.cmpi sgt, %9, %274 : vector<8x1xi32>
    %276 = vector.shape_cast %275 : vector<8x1xi1> to vector<8x1xi1>
    %277 = vector.broadcast %276 : vector<8x1xi1> to vector<8x32xi1>
    %278 = arith.select %277, %273, %245 : vector<8x32xi1>, vector<8x32xf32>
    %c0_64 = arith.constant 0 : index
    %c0_65 = arith.constant 0 : index
    %279 = vector.load %arg8[%c0_64, %c0_65] : memref<1x32xf32, #tpu.memory_space<vmem>>, vector<1x32xf32>
    %280 = vector.broadcast %279 : vector<1x32xf32> to vector<8x32xf32>
    %281 = arith.mulf %278, %280 : vector<8x32xf32>
    %cst_66 = arith.constant dense<0.000000e+00> : vector<8xf32>
    %282 = vector.multi_reduction <add>, %281, %cst_66 [1] : vector<8x32xf32> to vector<8xf32>
    %283 = vector.shape_cast %282 : vector<8xf32> to vector<8x1xf32>
    %c0_67 = arith.constant 0 : index
    %c0_68 = arith.constant 0 : index
    %284 = vector.load %arg9[%c0_67, %c0_68] : memref<1x1xf32, #tpu.memory_space<vmem>>, vector<1x1xf32>
    %285 = vector.broadcast %284 : vector<1x1xf32> to vector<8x1xf32>
    %286 = arith.addf %283, %285 : vector<8x1xf32>
    %c0_69 = arith.constant 0 : index
    %c0_70 = arith.constant 0 : index
    %287 = vector.load %arg10[%c0_69, %c0_70] : memref<8x1xf32, #tpu.memory_space<vmem>>, vector<8x1xf32>
    tpu.vector_store %arg10[%c0_69, %c0_70], %286 {strides = array<i32>} : memref<8x1xf32, #tpu.memory_space<vmem>>, vector<8x1xf32>,
    return
  }
}

</mosaic_0001>

<bundles_post_ra>
// kernel: gru_rnn_forward.1
= control target key start
LH: loop header
LB: loop body
LE: loop exit
PB: predicated region body
PF: predicated region fallthrough
CT: control target
= control target key end

     0   :  { %vm51_vm0 = vcmask 130048   ;;  %v1346_v14 = vmov 0.0   ;;  %s1347_s23 = smov 64   ;;  %s1348_s24 = smov 32   ;;  %v1349_v39 = vmov 0   ;;  %vm131_vm11 = vcmask 261120   ;;  %s1758_s4 = inlined_call_operand.vmem [shape: f32[32,32], index: 4, kind: input, shape index: {}]   ;;  %s1759_s2 = inlined_call_operand.vmem [shape: f32[16,96], index: 2, kind: input, shape index: {}]   ;;  %s1760_s0 = inlined_call_operand.vmem [shape: f32[64,16], index: 0, kind: input, shape index: {}]   ;;  %s1761_s6 = inlined_call_operand.vmem [shape: f32[32,32], index: 6, kind: input, shape index: {}]   ;;  %s1762_s5 = inlined_call_operand.vmem [shape: f32[32,32], index: 5, kind: input, shape index: {}]   ;;  %s1763_s3 = inlined_call_operand.vmem [shape: f32[1,96], index: 3, kind: input, shape index: {}]   ;;  %s1764_s7 = inlined_call_operand.vmem [shape: f32[1,32], index: 7, kind: input, shape index: {}]   ;;  %s1765_s1 = inlined_call_operand.vmem [shape: s32[8,1], index: 1, kind: input, shape index: {}]   ;;  %s1766_s8 = inlined_call_operand.vmem [shape: f32[1,32], index: 8, kind: input, shape index: {}]   ;;  %s1767_s9 = inlined_call_operand.<no memory space> [shape: f32[1,1], index: 9, kind: input, shape index: {}]   ;;  %s1768_s10 = inlined_call_operand.vmem [shape: f32[8,1], index: 10, kind: output, shape index: {}]  }
   0x1   :  { %v1409_v0 = vld [vmem:[%s1758_s4 + $0x18] sm:$0xff]  ;;  %v46_v1 = vld [vmem:[%s1759_s2 + $0x8] sm:$0xff]  ;;  %v1417_v2 = vld [vmem:[%s1758_s4 + $0x10] sm:$0xff]  ;;  %1256 = vset.pattern.permute.xlu1 %v1349_v39  ;;  %1257 = vset.pattern.permute.xlu2 %v1349_v39  ;;  %s1350_s27 = smov 96  }
   0x2   :  { %147 = vmatpush.msra.mxu1 %v1409_v0  ;;  %90 = vmatpush.msra.mxu0 %v46_v1  ;;  %v45_v3 = vld [vmem:[%s1759_s2] sm:$0xff]  ;;  %v1429_v5 = vld [vmem:[%s1758_s4 + $0x8] sm:$0xff]  ;;  %v1434_v6 = vld [vmem:[%s1761_s6 + $0x18] sm:$0xff] }
   0x3   :  { %v37_v4 = vld [vmem:[%s1760_s0] sm:$0xff]  ;;  %v1440_v7 = vld [vmem:[%s1761_s6 + $0x10] sm:$0xff]  ;;  %v1445_v8 = vld [vmem:[%s1762_s5 + $0x18] sm:$0xff]  ;;  %234 = vmatpush.msra.mxu3 %v1434_v6  ;;  %1258 = vset.pattern.permute.xlu0 %v1349_v39 }
   0x4   :  { %148 = vmatpush.msra.mxu1 %v1417_v2  ;;  %91 = vmatpush.msra.mxu0 %v45_v3  ;;  %v1451_v9 = vld [vmem:[%s1758_s4] sm:$0xff]  ;;  %v1457_v10 = vld [vmem:[%s1762_s5 + $0x10] sm:$0xff]  ;;  %v1463_v11 = vld [vmem:[%s1761_s6 + $0x8] sm:$0xff] }
   0x5   :  { %1206 = vmatmul.msk.f32.vlgmr.msra.gmra.mxu0 %vm51_vm0, %v37_v4  ;;  %187 = vmatpush.msra.mxu2 %v1445_v8  ;;  %v1470_v12 = vld [vmem:[%s1762_s5 + $0x8] sm:$0xff]  ;;  %v1476_v13 = vld [vmem:[%s1761_s6] sm:$0xff] }
   0x6   :  { %149 = vmatpush.msra.mxu1 %v1429_v5  ;;  %235 = vmatpush.msra.mxu3 %v1440_v7  ;;  %v1483_v15 = vld [vmem:[%s1762_s5] sm:$0xff]  ;;  %v38_v51 = vld [vmem:[%s1760_s0 + $0x8] sm:$0xff] }
   0x7   :  { %188 = vmatpush.msra.mxu2 %v1457_v10  ;;  %v1515_v16 = vld [vmem:[%s1763_s3] ss:$0 sm:$0xff] }
   0x8   :  { %150 = vmatpush.msra.mxu1 %v1451_v9  ;;  %236 = vmatpush.msra.mxu3 %v1463_v11  ;;  %v1521_v26 = vld [vmem:[%s1764_s7] ss:$0 sm:$0xff] }
   0x9   :  { %151 = vmatmul.f32.vlgmr.msra.gmra.mxu1 %v1346_v14  ;;  %189 = vmatpush.msra.mxu2 %v1470_v12  ;;  %v1532_v43 = vld [vmem:[%s1765_s1] sm:$0xff] }
   0xa   :  { %281 = vmatpush.msrb.mxu1 %v1409_v0  ;;  %237 = vmatpush.msra.mxu3 %v1476_v13  ;;  %vm257_vm5 = vcmp.gt.s32.totalorder %v1532_v43, 0 }
   0xb   :  { %238 = vmatmul.f32.vlgmr.msra.gmra.mxu3 %v1346_v14  ;;  %190 = vmatpush.msra.mxu2 %v1483_v15  ;;  %v258_v44 = vsel %vm257_vm5, 1, %v1349_v39 }
   0xc   :  { %191 = vmatmul.f32.vlgmr.msra.gmra.mxu2 %v1346_v14  ;;  %365 = vmatpush.msrb.mxu3 %v1434_v6 }
   0xd   :  { %321 = vmatpush.msrb.mxu2 %v1445_v8  ;;  %282 = vmatpush.msrb.mxu1 %v1417_v2 }
   0xe   :  { %366 = vmatpush.msrb.mxu3 %v1440_v7  ;;  %1207 = vmatmul.msk.f32.gmra.mxu0 %vm51_vm0, %v38_v51 }
   0xf   :  { %322 = vmatpush.msrb.mxu2 %v1457_v10  ;;  %283 = vmatpush.msrb.mxu1 %v1429_v5 }
  0x10   :  { %367 = vmatpush.msrb.mxu3 %v1463_v11 }
  0x11   :  { %323 = vmatpush.msrb.mxu2 %v1470_v12  ;;  %284 = vmatpush.msrb.mxu1 %v1451_v9 }
  0x12   :  { %368 = vmatpush.msrb.mxu3 %v1476_v13 }
  0x13   :  { %412 = vmatpush.msra.mxu1 %v1409_v0  ;;  %324 = vmatpush.msrb.mxu2 %v1483_v15 }
  0x14   :  { %496 = vmatpush.msra.mxu3 %v1434_v6 }
  0x15   :  { %452 = vmatpush.msra.mxu2 %v1445_v8  ;;  %413 = vmatpush.msra.mxu1 %v1417_v2 }
  0x16   :  { %497 = vmatpush.msra.mxu3 %v1440_v7 }
  0x17   :  { %453 = vmatpush.msra.mxu2 %v1457_v10  ;;  %414 = vmatpush.msra.mxu1 %v1429_v5 }
  0x18   :  { %498 = vmatpush.msra.mxu3 %v1463_v11 }
  0x19   :  { %454 = vmatpush.msra.mxu2 %v1470_v12  ;;  %415 = vmatpush.msra.mxu1 %v1451_v9 }
  0x1a   :  { %499 = vmatpush.msra.mxu3 %v1476_v13 }
  0x1b   :  { %455 = vmatpush.msra.mxu2 %v1483_v15 }
  0x82   :  { %v93_v17 = vpop.f32.mrf.mxu0 }
  0x83   :  { %v94_v18 = vadd.f32 %v1515_v16, %v93_v17 }
  0x86   :  { %v152_v19 = vpop.f32.mrf.mxu1 }
  0x87   :  { %v155_v20 = vadd.f32 %v152_v19, %v94_v18 }
  0x89   :  { %v1214_v21 = vmul.f32 -1.442695, %v155_v20 }
  0x8b   :  { %1263 = vpow2.f32 %v1214_v21 }
  0x8e   :  { %v239_v28 = vpop.f32.mrf.mxu3 }
  0x8f   :  { %v240_v32 = vadd.f32 %v1521_v26, %v239_v28  ;;  %v192_v38 = vpop.f32.mrf.mxu2 }
  0x91   :  { %v1264_v22 = vpop.eup %1263 }
  0x92   :  { %v159_v23 = vadd.f32 1.0, %v1264_v22 }
  0x94   :  { %1265 = vrcp.f32 %v159_v23  ;;  %v171_v29 = vand.u32 2147483648, %v159_v23  ;;  %v169_v31 = vand.u32 2147483647, %v159_v23  ;;  %vm165_vm2 = vweird.f32 %v159_v23 }
  0x96   :  { %v172_v34 = vor.u32 1.1754944e-38, %v171_v29  ;;  %vm170_vm4 = vcmp.eq.f32.partialorder %v169_v31, 8.507059e+37 }
  0x9a   :  { %v1266_v24 = vpop.eup %1265 }
  0x9b   :  { %v161_v25 = vmul.f32 %v1266_v24, %v159_v23  ;;  %vm166_vm1 = vweird.f32 %v1266_v24 }
  0x9c   :  { %vm167_vm3 = vmor %vm165_vm2, %vm166_vm1  ;;  %vm388_vm1 = vcmp.gt.s32.totalorder %v1532_v43, 1 }
  0x9d   :  { %v162_v27 = vsub.f32 1.0, %v161_v25 }
  0x9f   :  { %v163_v30 = vmul.f32 %v1266_v24, %v162_v27 }
  0xa1   :  { %v164_v33 = vadd.f32 %v1266_v24, %v163_v30 }
  0xa3   :  { %v168_v35 = vsel %vm167_vm3, %v1266_v24, %v164_v33 }
  0xa4   :  { %v173_v36 = vsel %vm170_vm4, %v172_v34, %v168_v35 }
  0xa5   :  { %v242_v37 = vmul.f32 %v240_v32, %v173_v36 }
  0xa7   :  { %244 = vrot.lane.b32.xlu0 %v242_v37, %s1347_s23 }
  0xaf   :  { %196 = vrot.lane.b32.xlu0 %v192_v38, %s1348_s24 }
 0x119   :  { %v245_v40 = vpop.permute.xlu0 %244 }
 0x11a   :  { %v247_v41 = vadd.f32 %v245_v40, %v94_v18 }
 0x11c   :  { %1267 = vtanh.f32 %v247_v41  ;;  %v389_v41 = vsel %vm388_vm1, 1, %v1349_v39 }
 0x121   :  { %v197_v45 = vpop.permute.xlu0 %196 }
 0x122   :  { %v1268_v42 = vpop.eup %1267  ;;  %v199_v46 = vadd.f32 %v197_v45, %v94_v18  ;;  %v96_v18 = vpop.f32.mrf.mxu0 }
 0x123   :  { %251 = vrot.lane.b32.xlu1 %v1268_v42, %s1350_s27  ;;  %v97_v19 = vadd.f32 %v1515_v16, %v96_v18 }
 0x124   :  { %v1215_v47 = vmul.f32 -1.442695, %v199_v46 }
 0x126   :  { %1269 = vpow2.f32 %v1215_v47 }
 0x12b   :  { %260 = vperm.xlu1 %1256, %v258_v44  }
 0x12c   :  { %v1270_v48 = vpop.eup %1269 }
 0x12d   :  { %v203_v49 = vadd.f32 1.0, %v1270_v48 }
 0x12f   :  { %1271 = vrcp.f32 %v203_v49  ;;  %v215_v56 = vand.u32 2147483648, %v203_v49  ;;  %vm209_vm7 = vweird.f32 %v203_v49  ;;  %v213_v57 = vand.u32 2147483647, %v203_v49 }
 0x131   :  { %v216_v59 = vor.u32 1.1754944e-38, %v215_v56  ;;  %vm214_vm9 = vcmp.eq.f32.partialorder %v213_v57, 8.507059e+37 }
 0x135   :  { %v1272_v50 = vpop.eup %1271 }
 0x136   :  { %v205_v52 = vmul.f32 %v1272_v50, %v203_v49  ;;  %vm210_vm6 = vweird.f32 %v1272_v50 }
 0x137   :  { %vm211_vm8 = vmor %vm209_vm7, %vm210_vm6 }
 0x138   :  { %v206_v53 = vsub.f32 1.0, %v205_v52  ;;  %v39_v52 = vld [vmem:[%s1760_s0 + $0x10] sm:$0xff] }
 0x139   :  { %1208 = vmatmul.msk.f32.gmra.mxu0 %vm51_vm0, %v39_v52 }
 0x13a   :  { %v207_v54 = vmul.f32 %v1272_v50, %v206_v53 }
 0x13c   :  { %v208_v55 = vadd.f32 %v1272_v50, %v207_v54 }
 0x13e   :  { %v212_v58 = vsel %vm211_vm8, %v1272_v50, %v208_v55 }
 0x13f   :  { %v217_v60 = vsel %vm214_vm9, %v216_v59, %v212_v58 }
 0x140   :  { %v249_v62 = vsub.f32 1.0, %v217_v60  ;;  %v255_v1 = vmul.f32 0.0, %v217_v60 }
 0x195   :  { %v252_v61 = vpop.permute.xlu1 %251 }
 0x196   :  { %v254_v63 = vmul.f32 %v252_v61, %v249_v62 }
 0x198   :  { %v256_v3 = vadd.f32 %v255_v1, %v254_v63 }
 0x19d   :  { %v261_v4 = vpop.permute.xlu1 %260 }
 0x19e   :  { %vm262_vm10 = vcmp.eq.s32.totalorder %v261_v4, 1 }
 0x19f   :  { %v1541_v14 = vsel %vm262_vm10, %v256_v3, 0.0 }
 0x1a0   :  { %265 = vrot.lane.b32.xlu2 %v1541_v14, %s1350_s27 }
 0x1fa   :  { %v266_v17 = vpop.permute.xlu2 %265 }
 0x1fb   :  { %1216 = vmatmul.msk.f32.vlgmr.msrb.gmra.mxu1 %vm131_vm11, %v266_v17  ;;  %1218 = vmatmul.msk.f32.vlgmr.msrb.gmra.mxu2 %vm131_vm11, %v266_v17 }
 0x1fc   :  { %1220 = vmatmul.msk.f32.vlgmr.msrb.gmra.mxu3 %vm131_vm11, %v266_v17  ;;  %543 = vmatpush.msrb.mxu1 %v1409_v0 }
 0x1fd   :  { %583 = vmatpush.msrb.mxu2 %v1445_v8  ;;  %627 = vmatpush.msrb.mxu3 %v1434_v6 }
 0x1fe   :  { %544 = vmatpush.msrb.mxu1 %v1417_v2 }
 0x1ff   :  { %584 = vmatpush.msrb.mxu2 %v1457_v10  ;;  %628 = vmatpush.msrb.mxu3 %v1440_v7 }
 0x200   :  { %545 = vmatpush.msrb.mxu1 %v1429_v5 }
 0x201   :  { %585 = vmatpush.msrb.mxu2 %v1470_v12  ;;  %629 = vmatpush.msrb.mxu3 %v1463_v11 }
 0x202   :  { %546 = vmatpush.msrb.mxu1 %v1451_v9 }
 0x203   :  { %586 = vmatpush.msrb.mxu2 %v1483_v15  ;;  %630 = vmatpush.msrb.mxu3 %v1476_v13 }
 0x278   :  { %v286_v20 = vpop.f32.mrf.mxu1 }
 0x279   :  { %v289_v21 = vadd.f32 %v286_v20, %v97_v19 }
 0x27b   :  { %v1217_v22 = vmul.f32 -1.442695, %v289_v21 }
 0x27d   :  { %1273 = vpow2.f32 %v1217_v22 }
 0x27e   :  { %v326_v23 = vpop.f32.mrf.mxu2 }
 0x27f   :  { %330 = vrot.lane.b32.xlu0 %v326_v23, %s1348_s24  ;;  %v370_v33 = vpop.f32.mrf.mxu3 }
 0x280   :  { %v371_v37 = vadd.f32 %v1521_v26, %v370_v33 }
 0x283   :  { %v1274_v24 = vpop.eup %1273 }
 0x284   :  { %v293_v25 = vadd.f32 1.0, %v1274_v24 }
 0x286   :  { %1275 = vrcp.f32 %v293_v25  ;;  %v305_v30 = vand.u32 2147483648, %v293_v25  ;;  %v303_v32 = vand.u32 2147483647, %v293_v25  ;;  %vm299_vm13 = vweird.f32 %v293_v25 }
 0x288   :  { %v306_v35 = vor.u32 1.1754944e-38, %v305_v30  ;;  %vm304_vm15 = vcmp.eq.f32.partialorder %v303_v32, 8.507059e+37 }
 0x28c   :  { %v1276_v27 = vpop.eup %1275 }
 0x28d   :  { %v295_v28 = vmul.f32 %v1276_v27, %v293_v25  ;;  %vm300_vm12 = vweird.f32 %v1276_v27 }
 0x28e   :  { %vm301_vm14 = vmor %vm299_vm13, %vm300_vm12  ;;  %vm519_vm12 = vcmp.gt.s32.totalorder %v1532_v43, 2 }
 0x28f   :  { %v296_v29 = vsub.f32 1.0, %v295_v28 }
 0x291   :  { %v297_v31 = vmul.f32 %v1276_v27, %v296_v29 }
 0x293   :  { %v298_v34 = vadd.f32 %v1276_v27, %v297_v31 }
 0x295   :  { %v302_v36 = vsel %vm301_vm14, %v1276_v27, %v298_v34 }
 0x296   :  { %v307_v38 = vsel %vm304_vm15, %v306_v35, %v302_v36 }
 0x297   :  { %v373_v40 = vmul.f32 %v371_v37, %v307_v38 }
 0x299   :  { %375 = vrot.lane.b32.xlu2 %v373_v40, %s1347_s23 }
 0x2a1   :  { %391 = vperm.xlu2 %1257, %v389_v41  }
 0x2f1   :  { %v331_v46 = vpop.permute.xlu0 %330 }
 0x2f2   :  { %v333_v47 = vadd.f32 %v331_v46, %v97_v19 }
 0x2f3   :  { %v376_v42 = vpop.permute.xlu2 %375 }
 0x2f4   :  { %v378_v44 = vadd.f32 %v376_v42, %v97_v19  ;;  %v1219_v48 = vmul.f32 -1.442695, %v333_v47  ;;  %v520_v42 = vsel %vm519_vm12, 1, %v1349_v39 }
 0x2f6   :  { %1277 = vtanh.f32 %v378_v44 }
 0x2f7   :  { %1279 = vpow2.f32 %v1219_v48 }
 0x2fb   :  { %v392_v63 = vpop.permute.xlu2 %391 }
 0x2fc   :  { %v1278_v45 = vpop.eup %1277  ;;  %vm393_vm6 = vcmp.eq.s32.totalorder %v392_v63, 1 }
 0x2fd   :  { %382 = vrot.lane.b32.xlu1 %v1278_v45, %s1350_s27  ;;  %v1280_v49 = vpop.eup %1279 }
 0x2fe   :  { %v337_v50 = vadd.f32 1.0, %v1280_v49 }
 0x300   :  { %1281 = vrcp.f32 %v337_v50  ;;  %v349_v57 = vand.u32 2147483648, %v337_v50  ;;  %vm343_vm3 = vweird.f32 %v337_v50  ;;  %v347_v58 = vand.u32 2147483647, %v337_v50 }
 0x302   :  { %v350_v60 = vor.u32 1.1754944e-38, %v349_v57  ;;  %vm348_vm5 = vcmp.eq.f32.partialorder %v347_v58, 8.507059e+37 }
 0x306   :  { %v1282_v51 = vpop.eup %1281 }
 0x307   :  { %v339_v53 = vmul.f32 %v1282_v51, %v337_v50  ;;  %vm344_vm2 = vweird.f32 %v1282_v51 }
 0x308   :  { %vm345_vm4 = vmor %vm343_vm3, %vm344_vm2 }
 0x309   :  { %v340_v54 = vsub.f32 1.0, %v339_v53  ;;  %v40_v53 = vld [vmem:[%s1760_s0 + $0x18] sm:$0xff] }
 0x30a   :  { %1209 = vmatmul.msk.f32.gmra.mxu0 %vm51_vm0, %v40_v53 }
 0x30b   :  { %v341_v55 = vmul.f32 %v1282_v51, %v340_v54 }
 0x30d   :  { %v342_v56 = vadd.f32 %v1282_v51, %v341_v55 }
 0x30f   :  { %v346_v59 = vsel %vm345_vm4, %v1282_v51, %v342_v56 }
 0x310   :  { %v351_v61 = vsel %vm348_vm5, %v350_v60, %v346_v59 }
 0x311   :  { %v380_v62 = vsub.f32 1.0, %v351_v61  ;;  %v386_v3 = vmul.f32 %v351_v61, %v1541_v14 }
 0x36f   :  { %v383_v1 = vpop.permute.xlu1 %382 }
 0x370   :  { %v385_v4 = vmul.f32 %v383_v1, %v380_v62 }
 0x372   :  { %v387_v17 = vadd.f32 %v386_v3, %v385_v4 }
 0x374   :  { %v1573_v18 = vsel %vm393_vm6, %v387_v17, %v1541_v14  ;;  %v99_v14 = vpop.f32.mrf.mxu0 }
 0x375   :  { %396 = vrot.lane.b32.xlu0 %v1573_v18, %s1350_s27  ;;  %v100_v20 = vadd.f32 %v1515_v16, %v99_v14 }
 0x3e7   :  { %v397_v19 = vpop.permute.xlu0 %396 }
 0x3e8   :  { %1221 = vmatmul.msk.f32.vlgmr.msra.gmra.mxu1 %vm131_vm11, %v397_v19  ;;  %1223 = vmatmul.msk.f32.vlgmr.msra.gmra.mxu2 %vm131_vm11, %v397_v19 }
 0x3e9   :  { %1225 = vmatmul.msk.f32.vlgmr.msra.gmra.mxu3 %vm131_vm11, %v397_v19  ;;  %674 = vmatpush.msra.mxu1 %v1409_v0 }
 0x3ea   :  { %714 = vmatpush.msra.mxu2 %v1445_v8  ;;  %758 = vmatpush.msra.mxu3 %v1434_v6 }
 0x3eb   :  { %675 = vmatpush.msra.mxu1 %v1417_v2 }
 0x3ec   :  { %715 = vmatpush.msra.mxu2 %v1457_v10  ;;  %759 = vmatpush.msra.mxu3 %v1440_v7 }
 0x3ed   :  { %676 = vmatpush.msra.mxu1 %v1429_v5 }
 0x3ee   :  { %716 = vmatpush.msra.mxu2 %v1470_v12  ;;  %760 = vmatpush.msra.mxu3 %v1463_v11 }
 0x3ef   :  { %677 = vmatpush.msra.mxu1 %v1451_v9 }
 0x3f0   :  { %717 = vmatpush.msra.mxu2 %v1483_v15  ;;  %761 = vmatpush.msra.mxu3 %v1476_v13 }
 0x465   :  { %v417_v21 = vpop.f32.mrf.mxu1 }
 0x466   :  { %v420_v22 = vadd.f32 %v417_v21, %v100_v20 }
 0x468   :  { %v1222_v23 = vmul.f32 -1.442695, %v420_v22 }
 0x46a   :  { %1283 = vpow2.f32 %v1222_v23 }
 0x46b   :  { %v457_v24 = vpop.f32.mrf.mxu2 }
 0x46c   :  { %461 = vrot.lane.b32.xlu2 %v457_v24, %s1348_s24  ;;  %v501_v34 = vpop.f32.mrf.mxu3 }
 0x46d   :  { %v502_v38 = vadd.f32 %v1521_v26, %v501_v34 }
 0x470   :  { %v1284_v25 = vpop.eup %1283 }
 0x471   :  { %v424_v27 = vadd.f32 1.0, %v1284_v25 }
 0x473   :  { %1285 = vrcp.f32 %v424_v27  ;;  %v436_v31 = vand.u32 2147483648, %v424_v27  ;;  %v434_v33 = vand.u32 2147483647, %v424_v27  ;;  %vm430_vm8 = vweird.f32 %v424_v27 }
 0x475   :  { %v437_v36 = vor.u32 1.1754944e-38, %v436_v31  ;;  %vm435_vm10 = vcmp.eq.f32.partialorder %v434_v33, 8.507059e+37 }
 0x479   :  { %v1286_v28 = vpop.eup %1285 }
 0x47a   :  { %v426_v29 = vmul.f32 %v1286_v28, %v424_v27  ;;  %vm431_vm7 = vweird.f32 %v1286_v28 }
 0x47b   :  { %vm432_vm9 = vmor %vm430_vm8, %vm431_vm7  ;;  %vm650_vm7 = vcmp.gt.s32.totalorder %v1532_v43, 3  ;;  %vm781_vm8 = vcmp.gt.s32.totalorder %v1532_v43, 4 }
 0x47c   :  { %v427_v30 = vsub.f32 1.0, %v426_v29 }
 0x47e   :  { %v428_v32 = vmul.f32 %v1286_v28, %v427_v30 }
 0x480   :  { %v429_v35 = vadd.f32 %v1286_v28, %v428_v32 }
 0x482   :  { %v433_v37 = vsel %vm432_vm9, %v1286_v28, %v429_v35 }
 0x483   :  { %v438_v40 = vsel %vm435_vm10, %v437_v36, %v433_v37 }
 0x484   :  { %v504_v41 = vmul.f32 %v502_v38, %v438_v40 }
 0x486   :  { %506 = vrot.lane.b32.xlu1 %v504_v41, %s1347_s23 }
 0x48e   :  { %522 = vperm.xlu1 %1256, %v520_v42  }
 0x4c6   :  { %v462_v47 = vpop.permute.xlu2 %461 }
 0x4c7   :  { %v464_v48 = vadd.f32 %v462_v47, %v100_v20 }
 0x4c9   :  { %v1224_v49 = vmul.f32 -1.442695, %v464_v48 }
 0x4f8   :  { %v507_v44 = vpop.permute.xlu1 %506 }
 0x4f9   :  { %v509_v45 = vadd.f32 %v507_v44, %v100_v20  ;;  %v651_v44 = vsel %vm650_vm7, 1, %v1349_v39 }
 0x4fb   :  { %1287 = vtanh.f32 %v509_v45  ;;  %v782_v45 = vsel %vm781_vm8, 1, %v1349_v39 }
 0x4fc   :  { %1289 = vpow2.f32 %v1224_v49 }
 0x500   :  { %v523_v3 = vpop.permute.xlu1 %522 }
 0x501   :  { %v1288_v46 = vpop.eup %1287  ;;  %vm524_vm2 = vcmp.eq.s32.totalorder %v523_v3, 1 }
 0x502   :  { %513 = vrot.lane.b32.xlu0 %v1288_v46, %s1350_s27  ;;  %v1290_v50 = vpop.eup %1289 }
 0x503   :  { %v468_v51 = vadd.f32 1.0, %v1290_v50 }
 0x505   :  { %1291 = vrcp.f32 %v468_v51  ;;  %v480_v58 = vand.u32 2147483648, %v468_v51  ;;  %vm474_vm14 = vweird.f32 %v468_v51  ;;  %v478_v59 = vand.u32 2147483647, %v468_v51 }
 0x507   :  { %v481_v61 = vor.u32 1.1754944e-38, %v480_v58  ;;  %vm479_vm1 = vcmp.eq.f32.partialorder %v478_v59, 8.507059e+37 }
 0x50b   :  { %v1292_v52 = vpop.eup %1291 }
 0x50c   :  { %v470_v54 = vmul.f32 %v1292_v52, %v468_v51  ;;  %vm475_vm13 = vweird.f32 %v1292_v52 }
 0x50d   :  { %vm476_vm15 = vmor %vm474_vm14, %vm475_vm13 }
 0x50e   :  { %v471_v55 = vsub.f32 1.0, %v470_v54 }
 0x510   :  { %v472_v56 = vmul.f32 %v1292_v52, %v471_v55  ;;  %v41_v55 = vld [vmem:[%s1760_s0 + $0x20] sm:$0xff] }
 0x511   :  { %1210 = vmatmul.msk.f32.gmra.mxu0 %vm51_vm0, %v41_v55  ;;  %v42_v55 = vld [vmem:[%s1760_s0 + $0x28] sm:$0xff] }
 0x512   :  { %v473_v57 = vadd.f32 %v1292_v52, %v472_v56 }
 0x514   :  { %v477_v60 = vsel %vm476_vm15, %v1292_v52, %v473_v57 }
 0x515   :  { %v482_v62 = vsel %vm479_vm1, %v481_v61, %v477_v60 }
 0x516   :  { %v511_v63 = vsub.f32 1.0, %v482_v62  ;;  %v517_v4 = vmul.f32 %v482_v62, %v1573_v18 }
 0x519   :  { %1211 = vmatmul.msk.f32.gmra.mxu0 %vm51_vm0, %v42_v55 }
 0x574   :  { %v514_v1 = vpop.permute.xlu0 %513 }
 0x575   :  { %v516_v17 = vmul.f32 %v514_v1, %v511_v63 }
 0x577   :  { %v518_v19 = vadd.f32 %v517_v4, %v516_v17 }
 0x579   :  { %v1605_v14 = vsel %vm524_vm2, %v518_v19, %v1573_v18  ;;  %v102_v18 = vpop.f32.mrf.mxu0 }
 0x57a   :  { %527 = vrot.lane.b32.xlu2 %v1605_v14, %s1350_s27  ;;  %v103_v21 = vadd.f32 %v1515_v16, %v102_v18 }
 0x5d4   :  { %v528_v20 = vpop.permute.xlu2 %527 }
 0x5d5   :  { %1226 = vmatmul.msk.f32.vlgmr.msrb.gmra.mxu1 %vm131_vm11, %v528_v20  ;;  %1228 = vmatmul.msk.f32.vlgmr.msrb.gmra.mxu2 %vm131_vm11, %v528_v20 }
 0x5d6   :  { %1230 = vmatmul.msk.f32.vlgmr.msrb.gmra.mxu3 %vm131_vm11, %v528_v20  ;;  %805 = vmatpush.msrb.mxu1 %v1409_v0 }
 0x5d7   :  { %845 = vmatpush.msrb.mxu2 %v1445_v8  ;;  %889 = vmatpush.msrb.mxu3 %v1434_v6 }
 0x5d8   :  { %806 = vmatpush.msrb.mxu1 %v1417_v2 }
 0x5d9   :  { %846 = vmatpush.msrb.mxu2 %v1457_v10  ;;  %890 = vmatpush.msrb.mxu3 %v1440_v7 }
 0x5da   :  { %807 = vmatpush.msrb.mxu1 %v1429_v5 }
 0x5db   :  { %847 = vmatpush.msrb.mxu2 %v1470_v12  ;;  %891 = vmatpush.msrb.mxu3 %v1463_v11 }
 0x5dc   :  { %808 = vmatpush.msrb.mxu1 %v1451_v9 }
 0x5dd   :  { %848 = vmatpush.msrb.mxu2 %v1483_v15  ;;  %892 = vmatpush.msrb.mxu3 %v1476_v13 }
 0x652   :  { %v548_v22 = vpop.f32.mrf.mxu1 }
 0x653   :  { %v551_v23 = vadd.f32 %v548_v22, %v103_v21 }
 0x655   :  { %v1227_v24 = vmul.f32 -1.442695, %v551_v23 }
 0x657   :  { %1293 = vpow2.f32 %v1227_v24 }
 0x658   :  { %v588_v25 = vpop.f32.mrf.mxu2 }
 0x659   :  { %592 = vrot.lane.b32.xlu1 %v588_v25, %s1348_s24  ;;  %v632_v35 = vpop.f32.mrf.mxu3 }
 0x65a   :  { %v633_v40 = vadd.f32 %v1521_v26, %v632_v35 }
 0x65d   :  { %v1294_v27 = vpop.eup %1293 }
 0x65e   :  { %v555_v28 = vadd.f32 1.0, %v1294_v27 }
 0x660   :  { %1295 = vrcp.f32 %v555_v28  ;;  %v567_v32 = vand.u32 2147483648, %v555_v28  ;;  %v565_v34 = vand.u32 2147483647, %v555_v28  ;;  %vm561_vm4 = vweird.f32 %v555_v28 }
 0x662   :  { %v568_v37 = vor.u32 1.1754944e-38, %v567_v32  ;;  %vm566_vm6 = vcmp.eq.f32.partialorder %v565_v34, 8.507059e+37 }
 0x666   :  { %v1296_v29 = vpop.eup %1295 }
 0x667   :  { %v557_v30 = vmul.f32 %v1296_v29, %v555_v28  ;;  %vm562_vm3 = vweird.f32 %v1296_v29 }
 0x668   :  { %vm563_vm5 = vmor %vm561_vm4, %vm562_vm3 }
 0x669   :  { %v558_v31 = vsub.f32 1.0, %v557_v30 }
 0x66b   :  { %v559_v33 = vmul.f32 %v1296_v29, %v558_v31 }
 0x66d   :  { %v560_v36 = vadd.f32 %v1296_v29, %v559_v33 }
 0x66f   :  { %v564_v38 = vsel %vm563_vm5, %v1296_v29, %v560_v36 }
 0x670   :  { %v569_v41 = vsel %vm566_vm6, %v568_v37, %v564_v38 }
 0x671   :  { %v635_v42 = vmul.f32 %v633_v40, %v569_v41 }
 0x673   :  { %637 = vrot.lane.b32.xlu0 %v635_v42, %s1347_s23 }
 0x67b   :  { %653 = vperm.xlu0 %1258, %v651_v44  }
 0x683   :  { %784 = vperm.xlu0 %1258, %v782_v45  }
 0x6cb   :  { %v593_v49 = vpop.permute.xlu1 %592 }
 0x6cc   :  { %v595_v50 = vadd.f32 %v593_v49, %v103_v21 }
 0x6ce   :  { %v1229_v51 = vmul.f32 -1.442695, %v595_v50 }
 0x6e5   :  { %v638_v46 = vpop.permute.xlu0 %637 }
 0x6e6   :  { %v640_v47 = vadd.f32 %v638_v46, %v103_v21 }
 0x6e8   :  { %1297 = vtanh.f32 %v640_v47 }
 0x6e9   :  { %1299 = vpow2.f32 %v1229_v51 }
 0x6ed   :  { %v654_v17 = vpop.permute.xlu0 %653 }
 0x6ee   :  { %v1298_v48 = vpop.eup %1297  ;;  %vm655_vm14 = vcmp.eq.s32.totalorder %v654_v17, 1 }
 0x6ef   :  { %644 = vrot.lane.b32.xlu2 %v1298_v48, %s1350_s27  ;;  %v1300_v52 = vpop.eup %1299 }
 0x6f0   :  { %v599_v53 = vadd.f32 1.0, %v1300_v52 }
 0x6f2   :  { %1301 = vrcp.f32 %v599_v53  ;;  %v611_v60 = vand.u32 2147483648, %v599_v53  ;;  %vm605_vm10 = vweird.f32 %v599_v53  ;;  %v609_v61 = vand.u32 2147483647, %v599_v53 }
 0x6f4   :  { %v612_v63 = vor.u32 1.1754944e-38, %v611_v60  ;;  %vm610_vm13 = vcmp.eq.f32.partialorder %v609_v61, 8.507059e+37 }
 0x6f5   :  { %v785_v17 = vpop.permute.xlu0 %784 }
 0x6f6   :  { %vm786_vm8 = vcmp.eq.s32.totalorder %v785_v17, 1 }
 0x6f8   :  { %v1302_v54 = vpop.eup %1301 }
 0x6f9   :  { %v601_v56 = vmul.f32 %v1302_v54, %v599_v53  ;;  %vm606_vm9 = vweird.f32 %v1302_v54 }
 0x6fa   :  { %vm607_vm12 = vmor %vm605_vm10, %vm606_vm9 }
 0x6fb   :  { %v602_v57 = vsub.f32 1.0, %v601_v56 }
 0x6fd   :  { %v603_v58 = vmul.f32 %v1302_v54, %v602_v57 }
 0x6ff   :  { %v604_v59 = vadd.f32 %v1302_v54, %v603_v58 }
 0x701   :  { %v608_v62 = vsel %vm607_vm12, %v1302_v54, %v604_v59 }
 0x702   :  { %v613_v1 = vsel %vm610_vm13, %v612_v63, %v608_v62 }
 0x703   :  { %v642_v3 = vsub.f32 1.0, %v613_v1  ;;  %v648_v19 = vmul.f32 %v613_v1, %v1605_v14 }
 0x749   :  { %v645_v4 = vpop.permute.xlu2 %644 }
 0x74a   :  { %v647_v20 = vmul.f32 %v645_v4, %v642_v3 }
 0x74c   :  { %v649_v18 = vadd.f32 %v648_v19, %v647_v20 }
 0x74e   :  { %v1639_v21 = vsel %vm655_vm14, %v649_v18, %v1605_v14  ;;  %v105_v14 = vpop.f32.mrf.mxu0  ;;  %vm912_vm14 = vcmp.gt.s32.totalorder %v1532_v43, 5 }
 0x74f   :  { %658 = vrot.lane.b32.xlu1 %v1639_v21, %s1350_s27  ;;  %v106_v23 = vadd.f32 %v1515_v16, %v105_v14 }
 0x7c1   :  { %v659_v22 = vpop.permute.xlu1 %658 }
 0x7c2   :  { %1231 = vmatmul.msk.f32.vlgmr.msra.gmra.mxu1 %vm131_vm11, %v659_v22  ;;  %1233 = vmatmul.msk.f32.vlgmr.msra.gmra.mxu2 %vm131_vm11, %v659_v22 }
 0x7c3   :  { %1235 = vmatmul.msk.f32.vlgmr.msra.gmra.mxu3 %vm131_vm11, %v659_v22  ;;  %936 = vmatpush.msra.mxu1 %v1409_v0 }
 0x7c4   :  { %976 = vmatpush.msra.mxu2 %v1445_v8  ;;  %1020 = vmatpush.msra.mxu3 %v1434_v6 }
 0x7c5   :  { %937 = vmatpush.msra.mxu1 %v1417_v2 }
 0x7c6   :  { %977 = vmatpush.msra.mxu2 %v1457_v10  ;;  %1021 = vmatpush.msra.mxu3 %v1440_v7 }
 0x7c7   :  { %938 = vmatpush.msra.mxu1 %v1429_v5 }
 0x7c8   :  { %978 = vmatpush.msra.mxu2 %v1470_v12  ;;  %1022 = vmatpush.msra.mxu3 %v1463_v11 }
 0x7c9   :  { %939 = vmatpush.msra.mxu1 %v1451_v9 }
 0x7ca   :  { %979 = vmatpush.msra.mxu2 %v1483_v15  ;;  %1023 = vmatpush.msra.mxu3 %v1476_v13 }
 0x83f   :  { %v679_v24 = vpop.f32.mrf.mxu1 }
 0x840   :  { %v682_v25 = vadd.f32 %v679_v24, %v106_v23 }
 0x842   :  { %v1232_v27 = vmul.f32 -1.442695, %v682_v25 }
 0x844   :  { %1303 = vpow2.f32 %v1232_v27 }
 0x845   :  { %v719_v28 = vpop.f32.mrf.mxu2 }
 0x846   :  { %723 = vrot.lane.b32.xlu1 %v719_v28, %s1348_s24  ;;  %v763_v37 = vpop.f32.mrf.mxu3 }
 0x847   :  { %v764_v42 = vadd.f32 %v1521_v26, %v763_v37 }
 0x84a   :  { %v1304_v29 = vpop.eup %1303 }
 0x84b   :  { %v686_v30 = vadd.f32 1.0, %v1304_v29 }
 0x84d   :  { %1305 = vrcp.f32 %v686_v30  ;;  %v698_v34 = vand.u32 2147483648, %v686_v30  ;;  %v696_v36 = vand.u32 2147483647, %v686_v30  ;;  %vm692_vm1 = vweird.f32 %v686_v30 }
 0x84f   :  { %v699_v40 = vor.u32 1.1754944e-38, %v698_v34  ;;  %vm697_vm3 = vcmp.eq.f32.partialorder %v696_v36, 8.507059e+37 }
 0x853   :  { %v1306_v31 = vpop.eup %1305 }
 0x854   :  { %v688_v32 = vmul.f32 %v1306_v31, %v686_v30  ;;  %vm693_vm15 = vweird.f32 %v1306_v31 }
 0x855   :  { %vm694_vm2 = vmor %vm692_vm1, %vm693_vm15 }
 0x856   :  { %v689_v33 = vsub.f32 1.0, %v688_v32  ;;  %v913_v32 = vsel %vm912_vm14, 1, %v1349_v39 }
 0x858   :  { %v690_v35 = vmul.f32 %v1306_v31, %v689_v33 }
 0x85a   :  { %v691_v38 = vadd.f32 %v1306_v31, %v690_v35 }
 0x85c   :  { %v695_v41 = vsel %vm694_vm2, %v1306_v31, %v691_v38 }
 0x85d   :  { %v700_v44 = vsel %vm697_vm3, %v699_v40, %v695_v41 }
 0x85e   :  { %v766_v45 = vmul.f32 %v764_v42, %v700_v44  ;;  %v43_v42 = vld [vmem:[%s1760_s0 + $0x30] sm:$0xff] }
 0x85f   :  { %1212 = vmatmul.msk.f32.gmra.mxu0 %vm51_vm0, %v43_v42 }
 0x860   :  { %768 = vrot.lane.b32.xlu2 %v766_v45, %s1347_s23 }
 0x8b8   :  { %v724_v49 = vpop.permute.xlu1 %723 }
 0x8b9   :  { %v726_v50 = vadd.f32 %v724_v49, %v106_v23 }
 0x8ba   :  { %v769_v46 = vpop.permute.xlu2 %768 }
 0x8bb   :  { %v771_v47 = vadd.f32 %v769_v46, %v106_v23  ;;  %v1234_v51 = vmul.f32 -1.442695, %v726_v50 }
 0x8bd   :  { %1307 = vtanh.f32 %v771_v47 }
 0x8be   :  { %1309 = vpow2.f32 %v1234_v51 }
 0x8c3   :  { %v1308_v48 = vpop.eup %1307 }
 0x8c4   :  { %775 = vrot.lane.b32.xlu2 %v1308_v48, %s1350_s27  ;;  %v1310_v52 = vpop.eup %1309 }
 0x8c5   :  { %v730_v53 = vadd.f32 1.0, %v1310_v52 }
 0x8c7   :  { %1311 = vrcp.f32 %v730_v53  ;;  %v742_v60 = vand.u32 2147483648, %v730_v53  ;;  %vm736_vm5 = vweird.f32 %v730_v53  ;;  %v740_v61 = vand.u32 2147483647, %v730_v53 }
 0x8c9   :  { %v743_v63 = vor.u32 1.1754944e-38, %v742_v60  ;;  %vm741_vm7 = vcmp.eq.f32.partialorder %v740_v61, 8.507059e+37 }
 0x8cd   :  { %v1312_v54 = vpop.eup %1311 }
 0x8ce   :  { %v732_v56 = vmul.f32 %v1312_v54, %v730_v53  ;;  %vm737_vm4 = vweird.f32 %v1312_v54 }
 0x8cf   :  { %vm738_vm6 = vmor %vm736_vm5, %vm737_vm4 }
 0x8d0   :  { %v733_v57 = vsub.f32 1.0, %v732_v56 }
 0x8d2   :  { %v734_v58 = vmul.f32 %v1312_v54, %v733_v57 }
 0x8d4   :  { %v735_v59 = vadd.f32 %v1312_v54, %v734_v58 }
 0x8d6   :  { %v739_v62 = vsel %vm738_vm6, %v1312_v54, %v735_v59 }
 0x8d7   :  { %v744_v1 = vsel %vm741_vm7, %v743_v63, %v739_v62 }
 0x8d8   :  { %v773_v3 = vsub.f32 1.0, %v744_v1  ;;  %v779_v19 = vmul.f32 %v744_v1, %v1639_v21 }
 0x91e   :  { %v776_v4 = vpop.permute.xlu2 %775 }
 0x91f   :  { %v778_v20 = vmul.f32 %v776_v4, %v773_v3 }
 0x921   :  { %v780_v18 = vadd.f32 %v779_v19, %v778_v20 }
 0x923   :  { %v1669_v22 = vsel %vm786_vm8, %v780_v18, %v1639_v21 }
 0x924   :  { %789 = vrot.lane.b32.xlu1 %v1669_v22, %s1350_s27 }
 0x996   :  { %v790_v14 = vpop.permute.xlu1 %789 }
 0x997   :  { %1236 = vmatmul.msk.f32.vlgmr.msrb.gmra.mxu1 %vm131_vm11, %v790_v14  ;;  %1238 = vmatmul.msk.f32.vlgmr.msrb.gmra.mxu2 %vm131_vm11, %v790_v14 }
 0x998   :  { %1240 = vmatmul.msk.f32.vlgmr.msrb.gmra.mxu3 %vm131_vm11, %v790_v14  ;;  %1067 = vmatpush.msrb.mxu1 %v1409_v0  ;;  %v108_v0 = vpop.f32.mrf.mxu0 }
 0x999   :  { %1107 = vmatpush.msrb.mxu2 %v1445_v8  ;;  %1151 = vmatpush.msrb.mxu3 %v1434_v6  ;;  %v109_v6 = vadd.f32 %v1515_v16, %v108_v0 }
 0x99a   :  { %1068 = vmatpush.msrb.mxu1 %v1417_v2 }
 0x99b   :  { %1108 = vmatpush.msrb.mxu2 %v1457_v10  ;;  %1152 = vmatpush.msrb.mxu3 %v1440_v7 }
 0x99c   :  { %1069 = vmatpush.msrb.mxu1 %v1429_v5 }
 0x99d   :  { %1109 = vmatpush.msrb.mxu2 %v1470_v12  ;;  %1153 = vmatpush.msrb.mxu3 %v1463_v11 }
 0x99e   :  { %1070 = vmatpush.msrb.mxu1 %v1451_v9 }
 0x99f   :  { %1110 = vmatpush.msrb.mxu2 %v1483_v15  ;;  %1154 = vmatpush.msrb.mxu3 %v1476_v13 }
 0x9a0   :  { %v111_v61 = vpop.f32.mrf.mxu0 }
 0x9a1   :  { %v112_v62 = vadd.f32 %v1515_v16, %v111_v61 }
 0xa14   :  { %v810_v2 = vpop.f32.mrf.mxu1 }
 0xa15   :  { %v813_v8 = vadd.f32 %v810_v2, %v109_v6 }
 0xa17   :  { %v1237_v10 = vmul.f32 -1.442695, %v813_v8 }
 0xa19   :  { %1313 = vpow2.f32 %v1237_v10 }
 0xa1a   :  { %v850_v7 = vpop.f32.mrf.mxu2 }
 0xa1b   :  { %854 = vrot.lane.b32.xlu0 %v850_v7, %s1348_s24  ;;  %v894_v24 = vpop.f32.mrf.mxu3  ;;  %v1713_v7 = vld [vmem:[%s1764_s7] ss:$0 sm:$0xff] }
 0xa1c   :  { %v895_v29 = vadd.f32 %v1521_v26, %v894_v24 }
 0xa1f   :  { %v1314_v5 = vpop.eup %1313 }
 0xa20   :  { %v817_v12 = vadd.f32 1.0, %v1314_v5 }
 0xa22   :  { %1315 = vrcp.f32 %v817_v12  ;;  %v829_v23 = vand.u32 2147483648, %v817_v12  ;;  %v827_v13 = vand.u32 2147483647, %v817_v12  ;;  %vm823_vm10 = vweird.f32 %v817_v12 }
 0xa24   :  { %v830_v27 = vor.u32 1.1754944e-38, %v829_v23  ;;  %vm828_vm13 = vcmp.eq.f32.partialorder %v827_v13, 8.507059e+37 }
 0xa28   :  { %v1316_v11 = vpop.eup %1315 }
 0xa29   :  { %v819_v21 = vmul.f32 %v1316_v11, %v817_v12  ;;  %vm824_vm9 = vweird.f32 %v1316_v11 }
 0xa2a   :  { %vm825_vm12 = vmor %vm823_vm10, %vm824_vm9  ;;  %vm1043_vm9 = vcmp.gt.s32.totalorder %v1532_v43, 6  ;;  %v44_v43 = vld [vmem:[%s1760_s0 + $0x38] sm:$0xff] }
 0xa2b   :  { %v820_v9 = vsub.f32 1.0, %v819_v21  ;;  %v1044_v21 = vsel %vm1043_vm9, 1, %v1349_v39  ;;  %1213 = vmatmul.msk.f32.gmra.mxu0 %vm51_vm0, %v44_v43 }
 0xa2d   :  { %v821_v15 = vmul.f32 %v1316_v11, %v820_v9 }
 0xa2f   :  { %v822_v25 = vadd.f32 %v1316_v11, %v821_v15 }
 0xa31   :  { %v826_v28 = vsel %vm825_vm12, %v1316_v11, %v822_v25 }
 0xa32   :  { %v831_v30 = vsel %vm828_vm13, %v830_v27, %v826_v28 }
 0xa33   :  { %v897_v31 = vmul.f32 %v895_v29, %v831_v30 }
 0xa35   :  { %899 = vrot.lane.b32.xlu2 %v897_v31, %s1347_s23 }
 0xa3d   :  { %915 = vperm.xlu2 %1257, %v913_v32  }
 0xa8d   :  { %v855_v36 = vpop.permute.xlu0 %854 }
 0xa8e   :  { %v857_v37 = vadd.f32 %v855_v36, %v109_v6 }
 0xa8f   :  { %v900_v33 = vpop.permute.xlu2 %899 }
 0xa90   :  { %v902_v34 = vadd.f32 %v900_v33, %v109_v6  ;;  %v1239_v38 = vmul.f32 -1.442695, %v857_v37 }
 0xa92   :  { %1317 = vtanh.f32 %v902_v34 }
 0xa93   :  { %1319 = vpow2.f32 %v1239_v38 }
 0xa97   :  { %v916_v55 = vpop.permute.xlu2 %915 }
 0xa98   :  { %v1318_v35 = vpop.eup %1317  ;;  %vm917_vm4 = vcmp.eq.s32.totalorder %v916_v55, 1 }
 0xa99   :  { %906 = vrot.lane.b32.xlu1 %v1318_v35, %s1350_s27  ;;  %v1320_v26 = vpop.eup %1319 }
 0xa9a   :  { %v861_v40 = vadd.f32 1.0, %v1320_v26 }
 0xa9c   :  { %1321 = vrcp.f32 %v861_v40  ;;  %v873_v48 = vand.u32 2147483648, %v861_v40  ;;  %vm867_vm1 = vweird.f32 %v861_v40  ;;  %v871_v49 = vand.u32 2147483647, %v861_v40 }
 0xa9e   :  { %v874_v51 = vor.u32 1.1754944e-38, %v873_v48  ;;  %vm872_vm3 = vcmp.eq.f32.partialorder %v871_v49, 8.507059e+37  ;;  %v1344_v49 = vld [vmem:[%s1763_s3] ss:$0 sm:$0xff] }
 0xaa2   :  { %v1322_v41 = vpop.eup %1321 }
 0xaa3   :  { %v863_v44 = vmul.f32 %v1322_v41, %v861_v40  ;;  %vm868_vm15 = vweird.f32 %v1322_v41 }
 0xaa4   :  { %vm869_vm2 = vmor %vm867_vm1, %vm868_vm15 }
 0xaa5   :  { %v864_v45 = vsub.f32 1.0, %v863_v44 }
 0xaa7   :  { %v865_v46 = vmul.f32 %v1322_v41, %v864_v45 }
 0xaa8   :  { %v114_v48 = vpop.f32.mrf.mxu0 }
 0xaa9   :  { %v866_v47 = vadd.f32 %v1322_v41, %v865_v46 }
 0xaab   :  { %v870_v50 = vsel %vm869_vm2, %v1322_v41, %v866_v47 }
 0xaac   :  { %v875_v52 = vsel %vm872_vm3, %v874_v51, %v870_v50  ;;  %v115_v50 = vadd.f32 %v1344_v49, %v114_v48 }
 0xaad   :  { %v904_v53 = vsub.f32 1.0, %v875_v52  ;;  %v910_v56 = vmul.f32 %v875_v52, %v1669_v22 }
 0xb0b   :  { %v907_v54 = vpop.permute.xlu1 %906 }
 0xb0c   :  { %v909_v57 = vmul.f32 %v907_v54, %v904_v53 }
 0xb0e   :  { %v911_v58 = vadd.f32 %v910_v56, %v909_v57 }
 0xb10   :  { %v1701_v59 = vsel %vm917_vm4, %v911_v58, %v1669_v22 }
 0xb11   :  { %920 = vrot.lane.b32.xlu0 %v1701_v59, %s1350_s27 }
 0xb83   :  { %v921_v60 = vpop.permute.xlu0 %920 }
 0xb84   :  { %1241 = vmatmul.msk.f32.vlgmr.msra.gmra.mxu1 %vm131_vm11, %v921_v60  ;;  %1243 = vmatmul.msk.f32.vlgmr.msra.gmra.mxu2 %vm131_vm11, %v921_v60 }
 0xb85   :  { %1245 = vmatmul.msk.f32.vlgmr.msra.gmra.mxu3 %vm131_vm11, %v921_v60 }
 0xc01   :  { %v941_v63 = vpop.f32.mrf.mxu1 }
 0xc02   :  { %v944_v1 = vadd.f32 %v941_v63, %v112_v62 }
 0xc04   :  { %v1242_v3 = vmul.f32 -1.442695, %v944_v1 }
 0xc06   :  { %1323 = vpow2.f32 %v1242_v3 }
 0xc07   :  { %v981_v4 = vpop.f32.mrf.mxu2 }
 0xc08   :  { %985 = vrot.lane.b32.xlu2 %v981_v4, %s1348_s24  ;;  %v1025_v2 = vpop.f32.mrf.mxu3 }
 0xc09   :  { %v1026_v5 = vadd.f32 %v1713_v7, %v1025_v2 }
 0xc0c   :  { %v1324_v17 = vpop.eup %1323 }
 0xc0d   :  { %v948_v19 = vadd.f32 1.0, %v1324_v17 }
 0xc0f   :  { %1325 = vrcp.f32 %v948_v19  ;;  %v960_v14 = vand.u32 2147483648, %v948_v19  ;;  %v958_v6 = vand.u32 2147483647, %v948_v19  ;;  %vm954_vm6 = vweird.f32 %v948_v19 }
 0xc11   :  { %v961_v16 = vor.u32 1.1754944e-38, %v960_v14  ;;  %vm959_vm8 = vcmp.eq.f32.partialorder %v958_v6, 8.507059e+37  ;;  %v1261_v14 = vld [vmem:[%s1766_s8] ss:$0 sm:$0xff] }
 0xc15   :  { %v1326_v20 = vpop.eup %1325 }
 0xc16   :  { %v950_v18 = vmul.f32 %v1326_v20, %v948_v19  ;;  %vm955_vm5 = vweird.f32 %v1326_v20 }
 0xc17   :  { %vm956_vm7 = vmor %vm954_vm6, %vm955_vm5 }
 0xc18   :  { %v951_v22 = vsub.f32 1.0, %v950_v18  ;;  %v1345_v18 = vld [vmem:[%s1765_s1] sm:$0xff] }
 0xc19   :  { %vm1174_vm4 = vcmp.gt.s32.totalorder %v1345_v18, 7 }
 0xc1a   :  { %v952_v0 = vmul.f32 %v1326_v20, %v951_v22  ;;  %v1175_v22 = vsel %vm1174_vm4, 1, %v1349_v39 }
 0xc1c   :  { %v953_v8 = vadd.f32 %v1326_v20, %v952_v0 }
 0xc1e   :  { %v957_v10 = vsel %vm956_vm7, %v1326_v20, %v953_v8 }
 0xc1f   :  { %v962_v12 = vsel %vm959_vm8, %v961_v16, %v957_v10 }
 0xc20   :  { %v1028_v11 = vmul.f32 %v1026_v5, %v962_v12 }
 0xc22   :  { %1030 = vrot.lane.b32.xlu1 %v1028_v11, %s1347_s23 }
 0xc2a   :  { %1046 = vperm.xlu1 %1256, %v1044_v21  }
 0xc62   :  { %v986_v13 = vpop.permute.xlu2 %985 }
 0xc63   :  { %v988_v24 = vadd.f32 %v986_v13, %v112_v62 }
 0xc65   :  { %v1244_v25 = vmul.f32 -1.442695, %v988_v24 }
 0xc94   :  { %v1031_v9 = vpop.permute.xlu1 %1030 }
 0xc95   :  { %v1033_v23 = vadd.f32 %v1031_v9, %v112_v62 }
 0xc97   :  { %1327 = vtanh.f32 %v1033_v23 }
 0xc98   :  { %1329 = vpow2.f32 %v1244_v25 }
 0xc9c   :  { %v1047_v41 = vpop.permute.xlu1 %1046 }
 0xc9d   :  { %v1328_v15 = vpop.eup %1327  ;;  %vm1048_vm0 = vcmp.eq.s32.totalorder %v1047_v41, 1 }
 0xc9e   :  { %1037 = vrot.lane.b32.xlu0 %v1328_v15, %s1350_s27  ;;  %v1330_v27 = vpop.eup %1329 }
 0xc9f   :  { %v992_v28 = vadd.f32 1.0, %v1330_v27 }
 0xca1   :  { %1331 = vrcp.f32 %v992_v28  ;;  %v1004_v34 = vand.u32 2147483648, %v992_v28  ;;  %vm998_vm12 = vweird.f32 %v992_v28  ;;  %v1002_v35 = vand.u32 2147483647, %v992_v28 }
 0xca3   :  { %v1005_v37 = vor.u32 1.1754944e-38, %v1004_v34  ;;  %vm1003_vm14 = vcmp.eq.f32.partialorder %v1002_v35, 8.507059e+37  ;;  %v15_v35 = vstv %s1767_s9 }
 0xca4   :  { %16 = vst [vmem:[#allocation2] sm:$0x1] %v15_v35 }
 0xca7   :  { %v1332_v29 = vpop.eup %1331 }
 0xca8   :  { %v994_v30 = vmul.f32 %v1332_v29, %v992_v28  ;;  %vm999_vm10 = vweird.f32 %v1332_v29 }
 0xca9   :  { %vm1000_vm13 = vmor %vm998_vm12, %vm999_vm10  ;;  %vm1200_vm10 = vcmask 7168  }
 0xcaa   :  { %v995_v31 = vsub.f32 1.0, %v994_v30 }
 0xcac   :  { %v996_v32 = vmul.f32 %v1332_v29, %v995_v31 }
 0xcae   :  { %v997_v33 = vadd.f32 %v1332_v29, %v996_v32 }
 0xcb0   :  { %v1001_v36 = vsel %vm1000_vm13, %v1332_v29, %v997_v33 }
 0xcb1   :  { %v1006_v38 = vsel %vm1003_vm14, %v1005_v37, %v1001_v36 }
 0xcb2   :  { %v1035_v26 = vsub.f32 1.0, %v1006_v38  ;;  %v1041_v42 = vmul.f32 %v1006_v38, %v1701_v59  ;;  %v1262_v38 = vld [vmem:[#allocation2] ss:$0 sm:$0xff] }
 0xd10   :  { %v1038_v40 = vpop.permute.xlu0 %1037 }
 0xd11   :  { %v1040_v44 = vmul.f32 %v1038_v40, %v1035_v26 }
 0xd13   :  { %v1042_v45 = vadd.f32 %v1041_v42, %v1040_v44 }
 0xd15   :  { %v1726_v46 = vsel %vm1048_vm0, %v1042_v45, %v1701_v59 }
 0xd16   :  { %1051 = vrot.lane.b32.xlu2 %v1726_v46, %s1350_s27 }
 0xd70   :  { %v1052_v47 = vpop.permute.xlu2 %1051 }
 0xd71   :  { %1246 = vmatmul.msk.f32.vlgmr.msrb.gmra.mxu1 %vm131_vm11, %v1052_v47  ;;  %1248 = vmatmul.msk.f32.vlgmr.msrb.gmra.mxu2 %vm131_vm11, %v1052_v47 }
 0xd72   :  { %1250 = vmatmul.msk.f32.vlgmr.msrb.gmra.mxu3 %vm131_vm11, %v1052_v47 }
 0xdee   :  { %v1072_v51 = vpop.f32.mrf.mxu1 }
 0xdef   :  { %v1075_v52 = vadd.f32 %v1072_v51, %v115_v50 }
 0xdf1   :  { %v1247_v53 = vmul.f32 -1.442695, %v1075_v52 }
 0xdf3   :  { %1333 = vpow2.f32 %v1247_v53 }
 0xdf4   :  { %v1112_v54 = vpop.f32.mrf.mxu2 }
 0xdf5   :  { %1116 = vrot.lane.b32.xlu1 %v1112_v54, %s1348_s24  ;;  %v1156_v63 = vpop.f32.mrf.mxu3 }
 0xdf6   :  { %v1157_v17 = vadd.f32 %v1713_v7, %v1156_v63 }
 0xdf9   :  { %v1334_v55 = vpop.eup %1333 }
 0xdfa   :  { %v1079_v56 = vadd.f32 1.0, %v1334_v55 }
 0xdfc   :  { %1335 = vrcp.f32 %v1079_v56  ;;  %v1091_v60 = vand.u32 2147483648, %v1079_v56  ;;  %v1089_v62 = vand.u32 2147483647, %v1079_v56  ;;  %vm1085_vm1 = vweird.f32 %v1079_v56 }
 0xdfd   :  { %1184 = vrot.lane.b32.xlu1 %v1261_v14, %s1348_s24 }
 0xdfe   :  { %v1092_v3 = vor.u32 1.1754944e-38, %v1091_v60  ;;  %vm1090_vm3 = vcmp.eq.f32.partialorder %v1089_v62, 8.507059e+37 }
 0xe02   :  { %v1336_v57 = vpop.eup %1335 }
 0xe03   :  { %v1081_v58 = vmul.f32 %v1336_v57, %v1079_v56  ;;  %vm1086_vm15 = vweird.f32 %v1336_v57 }
 0xe04   :  { %vm1087_vm2 = vmor %vm1085_vm1, %vm1086_vm15 }
 0xe05   :  { %v1082_v59 = vsub.f32 1.0, %v1081_v58 }
 0xe07   :  { %v1083_v61 = vmul.f32 %v1336_v57, %v1082_v59 }
 0xe09   :  { %v1084_v1 = vadd.f32 %v1336_v57, %v1083_v61 }
 0xe0b   :  { %v1088_v4 = vsel %vm1087_vm2, %v1336_v57, %v1084_v1 }
 0xe0c   :  { %v1093_v19 = vsel %vm1090_vm3, %v1092_v3, %v1088_v4 }
 0xe0d   :  { %v1159_v20 = vmul.f32 %v1157_v17, %v1093_v19 }
 0xe0f   :  { %1161 = vrot.lane.b32.xlu0 %v1159_v20, %s1347_s23 }
 0xe17   :  { %1177 = vperm.xlu0 %1258, %v1175_v22  }
 0xe67   :  { %v1117_v8 = vpop.permute.xlu1 %1116 }
 0xe68   :  { %v1119_v16 = vadd.f32 %v1117_v8, %v115_v50 }
 0xe6a   :  { %v1249_v10 = vmul.f32 -1.442695, %v1119_v16 }
 0xe6f   :  { %v1185_v32 = vpop.permute.xlu1 %1184 }
 0xe81   :  { %v1162_v0 = vpop.permute.xlu0 %1161 }
 0xe82   :  { %v1164_v6 = vadd.f32 %v1162_v0, %v115_v50 }
 0xe84   :  { %1337 = vtanh.f32 %v1164_v6 }
 0xe85   :  { %1339 = vpow2.f32 %v1249_v10 }
 0xe89   :  { %v1178_v29 = vpop.permute.xlu0 %1177 }
 0xe8a   :  { %v1338_v2 = vpop.eup %1337  ;;  %vm1179_vm9 = vcmp.eq.s32.totalorder %v1178_v29, 1 }
 0xe8b   :  { %1168 = vrot.lane.b32.xlu2 %v1338_v2, %s1350_s27  ;;  %v1340_v7 = vpop.eup %1339 }
 0xe8c   :  { %v1123_v5 = vadd.f32 1.0, %v1340_v7 }
 0xe8e   :  { %1341 = vrcp.f32 %v1123_v5  ;;  %v1135_v23 = vand.u32 2147483648, %v1123_v5  ;;  %vm1129_vm6 = vweird.f32 %v1123_v5  ;;  %v1133_v15 = vand.u32 2147483647, %v1123_v5 }
 0xe90   :  { %v1136_v24 = vor.u32 1.1754944e-38, %v1135_v23  ;;  %vm1134_vm8 = vcmp.eq.f32.partialorder %v1133_v15, 8.507059e+37 }
 0xe94   :  { %v1342_v39 = vpop.eup %1341 }
 0xe95   :  { %v1125_v12 = vmul.f32 %v1342_v39, %v1123_v5  ;;  %vm1130_vm5 = vweird.f32 %v1342_v39 }
 0xe96   :  { %vm1131_vm7 = vmor %vm1129_vm6, %vm1130_vm5 }
 0xe97   :  { %v1126_v11 = vsub.f32 1.0, %v1125_v12 }
 0xe99   :  { %v1127_v21 = vmul.f32 %v1342_v39, %v1126_v11 }
 0xe9b   :  { %v1128_v9 = vadd.f32 %v1342_v39, %v1127_v21 }
 0xe9d   :  { %v1132_v13 = vsel %vm1131_vm7, %v1342_v39, %v1128_v9 }
 0xe9e   :  { %v1137_v25 = vsel %vm1134_vm8, %v1136_v24, %v1132_v13 }
 0xe9f   :  { %v1166_v27 = vsub.f32 1.0, %v1137_v25  ;;  %v1172_v43 = vmul.f32 %v1137_v25, %v1726_v46 }
 0xee5   :  { %v1169_v28 = vpop.permute.xlu2 %1168 }
 0xee6   :  { %v1171_v30 = vmul.f32 %v1169_v28, %v1166_v27 }
 0xee8   :  { %v1173_v31 = vadd.f32 %v1172_v43, %v1171_v30 }
 0xeea   :  { %v1180_v33 = vsel %vm1179_vm9, %v1173_v31, %v1726_v46 }
 0xeeb   :  { %v1187_v34 = vmul.f32 %v1185_v32, %v1180_v33 }
 0xeed   :  { %1189 = vrot.lane.b32.xlu2 %v1187_v34, %s1350_s27 }
 0xf47   :  { %v1190_v36 = vpop.permute.xlu2 %1189 }
 0xf48   :  { %v1192_v37 = vsel %vm131_vm11, %v1190_v36, 0.0 }
 0xf49   :  { %1193 = vadd.xlane.f32.xlu0 %v1192_v37 }
 0xfbc   :  { %v1194_v26 = vpop.xlane.xlu0 %1193 }
 0xfbd   :  { %v1199_v40 = vadd.f32 %v1262_v38, %v1194_v26 }
 0xfbf   :  { %1201 = vst.msk [vmem:[%s1768_s10] sm:$0xff] %vm1200_vm10, %v1199_v40 }

</bundles_post_ra>
